<compile_context>
chip_gen: v7x
topology: tpu7x:2x2x1
jax: 0.10.0
libtpu: 0.0.40
codegen_flags: <defaults>
</compile_context>

<pallas_src>
import jax
import jax.numpy as jnp
from jax.experimental import pallas as pl
from jax.experimental.pallas import tpu as pltpu

EPS = 1e-5  # nn.LayerNorm default eps
HIGHEST = jax.lax.Precision.HIGHEST


def residual_block_kernel(xc_ref, wc_ref, g1_ref, be1_ref,
                          w2_ref, g2_ref, be2_ref,
                          bsk_ref, mask_ref, seg_ref, segt_ref, o_ref):
    Co = o_ref.shape[1]
    W = o_ref.shape[2]                 # = BN * L lanes
    BN = seg_ref.shape[1]
    L = W // BN
    K = w2_ref.shape[1] // Co          # conv2 kernel size (im2col columns = K*Co)
    P = (K - 1) // 2                   # 'same' conv padding

    seg = seg_ref[...]                 # (W, BN) f32 0/1 segment indicator
    segt = segt_ref[...]               # (BN, W)
    inv_l = 1.0 / L

    def layernorm(h, g, be):
        # One-pass stats per length-L lane segment.  The indicator matmuls are
        # exact in f32 (HIGHEST) and tiny (Co x W x BN), so they ride the MXU
        # while keeping LN numerics accurate.
        ssum = jnp.dot(h, seg, precision=HIGHEST,
                       preferred_element_type=jnp.float32)          # (Co, BN)
        ssq = jnp.dot(h * h, seg, precision=HIGHEST,
                      preferred_element_type=jnp.float32)           # (Co, BN)
        mu = ssum * inv_l
        var = ssq * inv_l - mu * mu
        inv = jax.lax.rsqrt(var + EPS)
        # Broadcast (Co, BN) stats back across each length-L lane segment.
        mu_f = jnp.dot(mu, segt, precision=HIGHEST,
                       preferred_element_type=jnp.float32)          # (Co, W)
        inv_f = jnp.dot(inv, segt, precision=HIGHEST,
                        preferred_element_type=jnp.float32)         # (Co, W)
        return (h - mu_f) * inv_f * g + be

    # ---- conv1 (single im2col matmul) fused with the 1x1 skip conv ----------
    # conv1 bias omitted: LayerNorm(mean-subtract over L) cancels it exactly.
    xc = xc_ref[0]                                                   # (K*Ci, W) bf16
    both = jnp.dot(wc_ref[...], xc,
                   preferred_element_type=jnp.float32)               # (2*Co, W) f32
    h1 = both[:Co]                                                   # conv1 pre-norm
    resid = both[Co:] + bsk_ref[...]                                 # skip path (bias kept)

    h = jnp.maximum(layernorm(h1, g1_ref[...], be1_ref[...]), 0.0)

    # ---- conv2: stack K rolled/masked taps along sublanes, ONE matmul -------
    # (conv2 bias omitted: cancelled by norm2's mean subtraction.)
    taps = []
    for k in range(K):                                               # static unroll (K=3)
        d = k - P                                                    # -1, 0, +1
        if d == 0:
            src = h
        else:
            # tap needs h[:, j + d]; zero lanes whose source crosses a
            # sequence / batch-segment boundary (== zero padding).
            src = pltpu.roll(h, shift=(-d) % W, axis=1) * mask_ref[k]
        taps.append(src.astype(jnp.bfloat16))
    hcat = jnp.concatenate(taps, axis=0)                             # (K*Co, W) bf16
    h2pre = jnp.dot(w2_ref[...], hcat,
                    preferred_element_type=jnp.float32)              # (Co, W) f32

    h2 = layernorm(h2pre, g2_ref[...], be2_ref[...])

    # ---- residual add + final relu ------------------------------------------
    o_ref[0] = jnp.maximum(h2 + resid, 0.0).astype(o_ref.dtype)


def residual_block(x, params, padding=1):
    """x: (N, Ci, L) float32. Returns (N, Co, L)."""
    w1, b1, g1, be1, w2, b2, g2, be2, wskip, bskip = params
    del b1, b2  # per-channel conv biases are exactly cancelled by the LayerNorms
    N, Ci, L = x.shape
    Co, _, K = w1.shape
    P = padding
    assert L == g1.shape[0], "nn.LayerNorm(out_channels) requires seq_len == out_channels"
    assert P == (K - 1) // 2, "kernel implements 'same' Conv1d (stride=1)"

    # Batch tile: pack BN batch elements along lanes so BN*L is lane-dense.
    BN = max(1, 128 // L) if L < 128 else 1
    W = BN * L
    Npad = -(-N // BN) * BN
    G = Npad // BN

    # -------- wrapper-side glue (plain JAX): im2col, batching, casts ---------
    xpad = jnp.pad(x, ((0, Npad - N), (0, 0), (P, P)))               # (Npad, Ci, L+2P)
    xim = jnp.concatenate([xpad[:, :, k:k + L] for k in range(K)], axis=1)  # (Npad, K*Ci, L)
    xg = (xim.reshape(G, BN, K * Ci, L)
             .transpose(0, 2, 1, 3)
             .reshape(G, K * Ci, W)
             .astype(jnp.bfloat16))                                  # lane index = b*L + l

    # conv1 weight in im2col layout, fused with the 1x1 skip weight (center tap).
    w1_flat = jnp.transpose(w1, (0, 2, 1)).reshape(Co, K * Ci)
    wsk_flat = jnp.zeros((Co, K * Ci), w1.dtype).at[:, P * Ci:(P + 1) * Ci].set(wskip[:, :, 0])
    wc = jnp.concatenate([w1_flat, wsk_flat], axis=0).astype(jnp.bfloat16)  # (2*Co, K*Ci)

    # conv2 weight in im2col layout: column index = k*Co + i.
    w2cat = jnp.transpose(w2, (0, 2, 1)).reshape(Co, K * Co).astype(jnp.bfloat16)

    bsc = bskip[:, None].astype(jnp.float32)
    g1t = jnp.tile(g1, BN)[None, :].astype(jnp.float32)              # (1, W)
    be1t = jnp.tile(be1, BN)[None, :].astype(jnp.float32)
    g2t = jnp.tile(g2, BN)[None, :].astype(jnp.float32)
    be2t = jnp.tile(be2, BN)[None, :].astype(jnp.float32)

    # Per-tap boundary masks for conv2 (applied after the lane roll).
    lpos = jnp.arange(W) % L
    masks = jnp.stack([((lpos + (k - P) >= 0) & (lpos + (k - P) < L))
                       for k in range(K)]).astype(jnp.float32)[:, None, :]   # (K, 1, W)
    # 0/1 segment indicator for the per-(channel, batch) LayerNorm over L.
    seg = (jnp.arange(W)[:, None] // L == jnp.arange(BN)[None, :]).astype(jnp.float32)  # (W, BN)
    segT = seg.T                                                     # (BN, W)

    kernel = pl.pallas_call(
        residual_block_kernel,
        out_shape=jax.ShapeDtypeStruct((G, Co, W), jnp.float32),
        grid=(G,),
        in_specs=[
            pl.BlockSpec((1, K * Ci, W), lambda g: (g, 0, 0)),       # im2col input slab
            pl.BlockSpec((2 * Co, K * Ci), lambda g: (0, 0)),        # conv1 + skip weight
            pl.BlockSpec((1, W), lambda g: (0, 0)),                  # norm1 gamma (tiled)
            pl.BlockSpec((1, W), lambda g: (0, 0)),                  # norm1 beta  (tiled)
            pl.BlockSpec((Co, K * Co), lambda g: (0, 0)),            # conv2 weight (im2col)
            pl.BlockSpec((1, W), lambda g: (0, 0)),                  # norm2 gamma (tiled)
            pl.BlockSpec((1, W), lambda g: (0, 0)),                  # norm2 beta  (tiled)
            pl.BlockSpec((Co, 1), lambda g: (0, 0)),                 # skip bias
            pl.BlockSpec((K, 1, W), lambda g: (0, 0, 0)),            # conv2 boundary masks
            pl.BlockSpec((W, BN), lambda g: (0, 0)),                 # segment indicator
            pl.BlockSpec((BN, W), lambda g: (0, 0)),                 # indicator transpose
        ],
        out_specs=pl.BlockSpec((1, Co, W), lambda g: (g, 0, 0)),     # lane-dense (W=128) slab
        compiler_params=pltpu.CompilerParams(
            dimension_semantics=("parallel",),
            vmem_limit_bytes=32 * 1024 * 1024,
        ),
    )
    og = kernel(xg, wc, g1t, be1t, w2cat, g2t, be2t, bsc, masks, seg, segT)
    out = og.reshape(G, Co, BN, L).transpose(0, 2, 1, 3).reshape(Npad, Co, L)[:N]
    return out.astype(x.dtype)


def ref_residual_block(x, params, padding=1):
    """Pure-JAX reference (faithful module semantics, incl. conv biases).
    Conv/skip matmuls use bf16 operands with f32 accumulation to mirror the
    kernel's MXU numerics; LayerNorm / elementwise math stays f32."""
    w1, b1, g1, be1, w2, b2, g2, be2, wskip, bskip = params

    def conv1d(inp, w, b, pad):
        K = w.shape[-1]
        L = inp.shape[-1]
        xp = jnp.pad(inp, ((0, 0), (0, 0), (pad, pad))).astype(jnp.bfloat16)
        wb = w.astype(jnp.bfloat16)
        y = sum(jnp.einsum('oc,ncl->nol', wb[:, :, k], xp[:, :, k:k + L],
                           preferred_element_type=jnp.float32)
                for k in range(K))
        return y + b[None, :, None]

    def ln(h, g, be):
        mu = h.mean(-1, keepdims=True)
        var = ((h - mu) ** 2).mean(-1, keepdims=True)
        return (h - mu) * jax.lax.rsqrt(var + EPS) * g + be

    h = jax.nn.relu(ln(conv1d(x, w1, b1, padding), g1, be1))
    h = ln(conv1d(h, w2, b2, padding), g2, be2)
    res = conv1d(x, wskip, bskip, 0)
    return jax.nn.relu(h + res)


if __name__ == "__main__":
    key = jax.random.PRNGKey(0)
    # L must equal out_channels because the module applies LayerNorm(out_channels)
    # to the (N, C, L) conv output (normalizes the last axis).
    # N=16 -> BN=8 batch elements per grid step, grid=(2,) (keeps both v7x TCs busy).
    N, Ci, Co, L, K = 16, 8, 16, 16, 3
    ks = jax.random.split(key, 8)

    x = jax.random.normal(ks[0], (N, Ci, L), jnp.float32)

    scale = 0.2
    w1 = scale * jax.random.normal(ks[1], (Co, Ci, K), jnp.float32)
    b1 = scale * jax.random.normal(ks[2], (Co,), jnp.float32)
    w2 = scale * jax.random.normal(ks[3], (Co, Co, K), jnp.float32)
    b2 = scale * jax.random.normal(ks[4], (Co,), jnp.float32)
    wskip = scale * jax.random.normal(ks[5], (Co, Ci, 1), jnp.float32)   # Ci != Co -> skip conv exists
    bskip = scale * jax.random.normal(ks[6], (Co,), jnp.float32)
    g1 = jnp.ones((Co,), jnp.float32) + 0.1 * jax.random.normal(ks[7], (Co,), jnp.float32)
    be1 = jnp.zeros((Co,), jnp.float32)
    g2 = jnp.ones((Co,), jnp.float32)
    be2 = jnp.zeros((Co,), jnp.float32)

    params = (w1, b1, g1, be1, w2, b2, g2, be2, wskip, bskip)

    out = jax.block_until_ready(residual_block(x, params))
    ref = ref_residual_block(x, params)

    assert out.shape == (N, Co, L)
    # bf16-operand / f32-accumulate MXU path -> ~1e-2 tolerance vs f32-ish reference.
    assert jnp.allclose(out, ref, atol=1e-2, rtol=1e-2), float(jnp.max(jnp.abs(out - ref)))
    print("KERNEL_OK")
</pallas_src>

<mosaic_0001>
module attributes {stable_mosaic.version = 11 : i64} {
  func.func @residual_block_kernel(%arg0: i32, %arg1: memref<1x24x128xbf16, #tpu.memory_space<vmem>>, %arg2: memref<32x24xbf16, #tpu.memory_space<vmem>>, %arg3: memref<1x128xf32, #tpu.memory_space<vmem>>, %arg4: memref<1x128xf32, #tpu.memory_space<vmem>>, %arg5: memref<16x48xbf16, #tpu.memory_space<vmem>>, %arg6: memref<1x128xf32, #tpu.memory_space<vmem>>, %arg7: memref<1x128xf32, #tpu.memory_space<vmem>>, %arg8: memref<16x1xf32, #tpu.memory_space<vmem>>, %arg9: memref<3x1x128xf32, #tpu.memory_space<vmem>>, %arg10: memref<128x8xf32, #tpu.memory_space<vmem>>, %arg11: memref<8x128xf32, #tpu.memory_space<vmem>>, %arg12: memref<1x16x128xf32, #tpu.memory_space<vmem>>) attributes {dimension_semantics = [#tpu.dimension_semantics<parallel>], iteration_bounds = array<i64: 2>, scalar_prefetch = 0 : i64, scratch_operands = 0 : i64, tpu.core_type = #tpu.core_type<tc>, window_params = [{transform_indices = @transform_0, window_bounds = array<i64: 1, 24, 128>}, {pipeline_mode = #tpu.pipeline_mode<synchronous>, transform_indices = @transform_1, window_bounds = array<i64: 32, 24>}, {pipeline_mode = #tpu.pipeline_mode<synchronous>, transform_indices = @transform_2, window_bounds = array<i64: 1, 128>}, {pipeline_mode = #tpu.pipeline_mode<synchronous>, transform_indices = @transform_3, window_bounds = array<i64: 1, 128>}, {pipeline_mode = #tpu.pipeline_mode<synchronous>, transform_indices = @transform_4, window_bounds = array<i64: 16, 48>}, {pipeline_mode = #tpu.pipeline_mode<synchronous>, transform_indices = @transform_5, window_bounds = array<i64: 1, 128>}, {pipeline_mode = #tpu.pipeline_mode<synchronous>, transform_indices = @transform_6, window_bounds = array<i64: 1, 128>}, {pipeline_mode = #tpu.pipeline_mode<synchronous>, transform_indices = @transform_7, window_bounds = array<i64: 16, 1>}, {pipeline_mode = #tpu.pipeline_mode<synchronous>, transform_indices = @transform_8, window_bounds = array<i64: 3, 1, 128>}, {pipeline_mode = #tpu.pipeline_mode<synchronous>, transform_indices = @transform_9, window_bounds = array<i64: 128, 8>}, {pipeline_mode = #tpu.pipeline_mode<synchronous>, transform_indices = @transform_10, window_bounds = array<i64: 8, 128>}, {transform_indices = @transform_11, window_bounds = array<i64: 1, 16, 128>}]} {
    %c0 = arith.constant 0 : index
    %c0_0 = arith.constant 0 : index
    %0 = vector.load %arg10[%c0, %c0_0] : memref<128x8xf32, #tpu.memory_space<vmem>>, vector<128x8xf32>
    %c0_1 = arith.constant 0 : index
    %c0_2 = arith.constant 0 : index
    %1 = vector.load %arg11[%c0_1, %c0_2] : memref<8x128xf32, #tpu.memory_space<vmem>>, vector<8x128xf32>
    %c0_3 = arith.constant 0 : index
    %c0_4 = arith.constant 0 : index
    %c0_5 = arith.constant 0 : index
    %2 = vector.load %arg1[%c0_3, %c0_4, %c0_5] : memref<1x24x128xbf16, #tpu.memory_space<vmem>>, vector<1x24x128xbf16>
    %3 = vector.shape_cast %2 : vector<1x24x128xbf16> to vector<24x128xbf16>
    %c0_6 = arith.constant 0 : index
    %c0_7 = arith.constant 0 : index
    %4 = vector.load %arg2[%c0_6, %c0_7] : memref<32x24xbf16, #tpu.memory_space<vmem>>, vector<32x24xbf16>
    %cst = arith.constant dense<0.000000e+00> : vector<32x128xf32>
    %5 = tpu.matmul %4, %3, %cst {dimension_numbers = #tpu.dot_dimension_numbers<[1], [0], [0], [1], [0, 0, 1, 1], [], []>} : vector<32x24xbf16>, vector<24x128xbf16>, vector<32x128xf32> -> vector<32x128xf32>
    %6 = vector.extract_strided_slice %5 {offsets = [0, 0], sizes = [16, 128], strides = [1, 1]} : vector<32x128xf32> to vector<16x128xf32>
    %7 = vector.extract_strided_slice %5 {offsets = [16, 0], sizes = [16, 128], strides = [1, 1]} : vector<32x128xf32> to vector<16x128xf32>
    %c0_8 = arith.constant 0 : index
    %c0_9 = arith.constant 0 : index
    %8 = vector.load %arg8[%c0_8, %c0_9] : memref<16x1xf32, #tpu.memory_space<vmem>>, vector<16x1xf32>
    %9 = vector.broadcast %8 : vector<16x1xf32> to vector<16x128xf32>
    %10 = arith.addf %7, %9 : vector<16x128xf32>
    %c0_10 = arith.constant 0 : index
    %c0_11 = arith.constant 0 : index
    %11 = vector.load %arg3[%c0_10, %c0_11] : memref<1x128xf32, #tpu.memory_space<vmem>>, vector<1x128xf32>
    %c0_12 = arith.constant 0 : index
    %c0_13 = arith.constant 0 : index
    %12 = vector.load %arg4[%c0_12, %c0_13] : memref<1x128xf32, #tpu.memory_space<vmem>>, vector<1x128xf32>
    %cst_14 = arith.constant dense<0.000000e+00> : vector<16x8xf32>
    %13 = tpu.matmul %6, %0, %cst_14 {dimension_numbers = #tpu.dot_dimension_numbers<[1], [0], [0], [1], [0, 0, 1, 1], [], []>, precision = #tpu.contract_precision<fp32>} : vector<16x128xf32>, vector<128x8xf32>, vector<16x8xf32> -> vector<16x8xf32>
    %14 = arith.mulf %6, %6 : vector<16x128xf32>
    %cst_15 = arith.constant dense<0.000000e+00> : vector<16x8xf32>
    %15 = tpu.matmul %14, %0, %cst_15 {dimension_numbers = #tpu.dot_dimension_numbers<[1], [0], [0], [1], [0, 0, 1, 1], [], []>, precision = #tpu.contract_precision<fp32>} : vector<16x128xf32>, vector<128x8xf32>, vector<16x8xf32> -> vector<16x8xf32>
    %cst_16 = arith.constant 6.250000e-02 : f32
    %16 = vector.broadcast %cst_16 : f32 to vector<16x8xf32>
    %17 = arith.mulf %13, %16 : vector<16x8xf32>
    %cst_17 = arith.constant 6.250000e-02 : f32
    %18 = vector.broadcast %cst_17 : f32 to vector<16x8xf32>
    %19 = arith.mulf %15, %18 : vector<16x8xf32>
    %20 = arith.mulf %17, %17 : vector<16x8xf32>
    %21 = arith.subf %19, %20 : vector<16x8xf32>
    %cst_18 = arith.constant 9.99999974E-6 : f32
    %22 = vector.broadcast %cst_18 : f32 to vector<16x8xf32>
    %23 = arith.addf %21, %22 : vector<16x8xf32>
    %24 = math.rsqrt %23 : vector<16x8xf32>
    %cst_19 = arith.constant dense<0.000000e+00> : vector<16x128xf32>
    %25 = tpu.matmul %17, %1, %cst_19 {dimension_numbers = #tpu.dot_dimension_numbers<[1], [0], [0], [1], [0, 0, 1, 1], [], []>, precision = #tpu.contract_precision<fp32>} : vector<16x8xf32>, vector<8x128xf32>, vector<16x128xf32> -> vector<16x128xf32>
    %cst_20 = arith.constant dense<0.000000e+00> : vector<16x128xf32>
    %26 = tpu.matmul %24, %1, %cst_20 {dimension_numbers = #tpu.dot_dimension_numbers<[1], [0], [0], [1], [0, 0, 1, 1], [], []>, precision = #tpu.contract_precision<fp32>} : vector<16x8xf32>, vector<8x128xf32>, vector<16x128xf32> -> vector<16x128xf32>
    %27 = arith.subf %6, %25 : vector<16x128xf32>
    %28 = arith.mulf %27, %26 : vector<16x128xf32>
    %29 = vector.broadcast %11 : vector<1x128xf32> to vector<16x128xf32>
    %30 = arith.mulf %28, %29 : vector<16x128xf32>
    %31 = vector.broadcast %12 : vector<1x128xf32> to vector<16x128xf32>
    %32 = arith.addf %30, %31 : vector<16x128xf32>
    %cst_21 = arith.constant 0.000000e+00 : f32
    %33 = vector.broadcast %cst_21 : f32 to vector<16x128xf32>
    %34 = arith.maximumf %32, %33 : vector<16x128xf32>
    %c1_i32 = arith.constant 1 : i32
    %35 = tpu.dynamic_rotate %34 by %c1_i32 dim 1 : vector<16x128xf32>, i32 -> vector<16x128xf32>
    %c0_22 = arith.constant 0 : index
    %c0_23 = arith.constant 0 : index
    %c0_24 = arith.constant 0 : index
    %36 = vector.load %arg9[%c0_22, %c0_23, %c0_24] : memref<3x1x128xf32, #tpu.memory_space<vmem>>, vector<1x1x128xf32>
    %37 = vector.shape_cast %36 : vector<1x1x128xf32> to vector<1x128xf32>
    %38 = vector.broadcast %37 : vector<1x128xf32> to vector<16x128xf32>
    %39 = arith.mulf %35, %38 : vector<16x128xf32>
    %40 = arith.truncf %39 : vector<16x128xf32> to vector<16x128xbf16>
    %41 = arith.truncf %34 : vector<16x128xf32> to vector<16x128xbf16>
    %c127_i32 = arith.constant 127 : i32
    %42 = tpu.dynamic_rotate %34 by %c127_i32 dim 1 : vector<16x128xf32>, i32 -> vector<16x128xf32>
    %c2 = arith.constant 2 : index
    %c0_25 = arith.constant 0 : index
    %c0_26 = arith.constant 0 : index
    %43 = vector.load %arg9[%c2, %c0_25, %c0_26] : memref<3x1x128xf32, #tpu.memory_space<vmem>>, vector<1x1x128xf32>
    %44 = vector.shape_cast %43 : vector<1x1x128xf32> to vector<1x128xf32>
    %45 = vector.broadcast %44 : vector<1x128xf32> to vector<16x128xf32>
    %46 = arith.mulf %42, %45 : vector<16x128xf32>
    %47 = arith.truncf %46 : vector<16x128xf32> to vector<16x128xbf16>
    %48 = tpu.concatenate %40, %41, %47 in 0 : vector<16x128xbf16>, vector<16x128xbf16>, vector<16x128xbf16> -> vector<48x128xbf16>
    %c0_27 = arith.constant 0 : index
    %c0_28 = arith.constant 0 : index
    %49 = vector.load %arg5[%c0_27, %c0_28] : memref<16x48xbf16, #tpu.memory_space<vmem>>, vector<16x48xbf16>
    %cst_29 = arith.constant dense<0.000000e+00> : vector<16x128xf32>
    %50 = tpu.matmul %49, %48, %cst_29 {dimension_numbers = #tpu.dot_dimension_numbers<[1], [0], [0], [1], [0, 0, 1, 1], [], []>} : vector<16x48xbf16>, vector<48x128xbf16>, vector<16x128xf32> -> vector<16x128xf32>
    %c0_30 = arith.constant 0 : index
    %c0_31 = arith.constant 0 : index
    %51 = vector.load %arg6[%c0_30, %c0_31] : memref<1x128xf32, #tpu.memory_space<vmem>>, vector<1x128xf32>
    %c0_32 = arith.constant 0 : index
    %c0_33 = arith.constant 0 : index
    %52 = vector.load %arg7[%c0_32, %c0_33] : memref<1x128xf32, #tpu.memory_space<vmem>>, vector<1x128xf32>
    %cst_34 = arith.constant dense<0.000000e+00> : vector<16x8xf32>
    %53 = tpu.matmul %50, %0, %cst_34 {dimension_numbers = #tpu.dot_dimension_numbers<[1], [0], [0], [1], [0, 0, 1, 1], [], []>, precision = #tpu.contract_precision<fp32>} : vector<16x128xf32>, vector<128x8xf32>, vector<16x8xf32> -> vector<16x8xf32>
    %54 = arith.mulf %50, %50 : vector<16x128xf32>
    %cst_35 = arith.constant dense<0.000000e+00> : vector<16x8xf32>
    %55 = tpu.matmul %54, %0, %cst_35 {dimension_numbers = #tpu.dot_dimension_numbers<[1], [0], [0], [1], [0, 0, 1, 1], [], []>, precision = #tpu.contract_precision<fp32>} : vector<16x128xf32>, vector<128x8xf32>, vector<16x8xf32> -> vector<16x8xf32>
    %cst_36 = arith.constant 6.250000e-02 : f32
    %56 = vector.broadcast %cst_36 : f32 to vector<16x8xf32>
    %57 = arith.mulf %53, %56 : vector<16x8xf32>
    %cst_37 = arith.constant 6.250000e-02 : f32
    %58 = vector.broadcast %cst_37 : f32 to vector<16x8xf32>
    %59 = arith.mulf %55, %58 : vector<16x8xf32>
    %60 = arith.mulf %57, %57 : vector<16x8xf32>
    %61 = arith.subf %59, %60 : vector<16x8xf32>
    %cst_38 = arith.constant 9.99999974E-6 : f32
    %62 = vector.broadcast %cst_38 : f32 to vector<16x8xf32>
    %63 = arith.addf %61, %62 : vector<16x8xf32>
    %64 = math.rsqrt %63 : vector<16x8xf32>
    %cst_39 = arith.constant dense<0.000000e+00> : vector<16x128xf32>
    %65 = tpu.matmul %57, %1, %cst_39 {dimension_numbers = #tpu.dot_dimension_numbers<[1], [0], [0], [1], [0, 0, 1, 1], [], []>, precision = #tpu.contract_precision<fp32>} : vector<16x8xf32>, vector<8x128xf32>, vector<16x128xf32> -> vector<16x128xf32>
    %cst_40 = arith.constant dense<0.000000e+00> : vector<16x128xf32>
    %66 = tpu.matmul %64, %1, %cst_40 {dimension_numbers = #tpu.dot_dimension_numbers<[1], [0], [0], [1], [0, 0, 1, 1], [], []>, precision = #tpu.contract_precision<fp32>} : vector<16x8xf32>, vector<8x128xf32>, vector<16x128xf32> -> vector<16x128xf32>
    %67 = arith.subf %50, %65 : vector<16x128xf32>
    %68 = arith.mulf %67, %66 : vector<16x128xf32>
    %69 = vector.broadcast %51 : vector<1x128xf32> to vector<16x128xf32>
    %70 = arith.mulf %68, %69 : vector<16x128xf32>
    %71 = vector.broadcast %52 : vector<1x128xf32> to vector<16x128xf32>
    %72 = arith.addf %70, %71 : vector<16x128xf32>
    %73 = arith.addf %72, %10 : vector<16x128xf32>
    %cst_41 = arith.constant 0.000000e+00 : f32
    %74 = vector.broadcast %cst_41 : f32 to vector<16x128xf32>
    %75 = arith.maximumf %73, %74 : vector<16x128xf32>
    %c0_42 = arith.constant 0 : index
    %c0_43 = arith.constant 0 : index
    %c0_44 = arith.constant 0 : index
    %76 = vector.load %arg12[%c0_42, %c0_43, %c0_44] : memref<1x16x128xf32, #tpu.memory_space<vmem>>, vector<1x16x128xf32>
    %77 = vector.shape_cast %76 : vector<1x16x128xf32> to vector<16x128xf32>
    %78 = vector.shape_cast %75 : vector<16x128xf32> to vector<1x16x128xf32>
    tpu.vector_store %arg12[%c0_42, %c0_43, %c0_44], %78 {strides = array<i32>} : memref<1x16x128xf32, #tpu.memory_space<vmem>>, vector<1x16x128xf32>,
    return
  }
  func.func @transform_0(%arg0: i32) -> (i32, i32, i32) {
    %c0_i32 = arith.constant 0 : i32
    %c0_i32_0 = arith.constant 0 : i32
    %c0_i32_1 = arith.constant 0 : i32
    return %arg0, %c0_i32, %c0_i32_0 : i32, i32, i32
  }
  func.func @transform_1(%arg0: i32) -> (i32, i32) {
    %c0_i32 = arith.constant 0 : i32
    %c0_i32_0 = arith.constant 0 : i32
    %c0_i32_1 = arith.constant 0 : i32
    return %c0_i32, %c0_i32_0 : i32, i32
  }
  func.func @transform_2(%arg0: i32) -> (i32, i32) {
    %c0_i32 = arith.constant 0 : i32
    %c0_i32_0 = arith.constant 0 : i32
    %c0_i32_1 = arith.constant 0 : i32
    return %c0_i32, %c0_i32_0 : i32, i32
  }
  func.func @transform_3(%arg0: i32) -> (i32, i32) {
    %c0_i32 = arith.constant 0 : i32
    %c0_i32_0 = arith.constant 0 : i32
    %c0_i32_1 = arith.constant 0 : i32
    return %c0_i32, %c0_i32_0 : i32, i32
  }
  func.func @transform_4(%arg0: i32) -> (i32, i32) {
    %c0_i32 = arith.constant 0 : i32
    %c0_i32_0 = arith.constant 0 : i32
    %c0_i32_1 = arith.constant 0 : i32
    return %c0_i32, %c0_i32_0 : i32, i32
  }
  func.func @transform_5(%arg0: i32) -> (i32, i32) {
    %c0_i32 = arith.constant 0 : i32
    %c0_i32_0 = arith.constant 0 : i32
    %c0_i32_1 = arith.constant 0 : i32
    return %c0_i32, %c0_i32_0 : i32, i32
  }
  func.func @transform_6(%arg0: i32) -> (i32, i32) {
    %c0_i32 = arith.constant 0 : i32
    %c0_i32_0 = arith.constant 0 : i32
    %c0_i32_1 = arith.constant 0 : i32
    return %c0_i32, %c0_i32_0 : i32, i32
  }
  func.func @transform_7(%arg0: i32) -> (i32, i32) {
    %c0_i32 = arith.constant 0 : i32
    %c0_i32_0 = arith.constant 0 : i32
    %c0_i32_1 = arith.constant 0 : i32
    return %c0_i32, %c0_i32_0 : i32, i32
  }
  func.func @transform_8(%arg0: i32) -> (i32, i32, i32) {
    %c0_i32 = arith.constant 0 : i32
    %c0_i32_0 = arith.constant 0 : i32
    %c0_i32_1 = arith.constant 0 : i32
    %c0_i32_2 = arith.constant 0 : i32
    return %c0_i32, %c0_i32_0, %c0_i32_1 : i32, i32, i32
  }
  func.func @transform_9(%arg0: i32) -> (i32, i32) {
    %c0_i32 = arith.constant 0 : i32
    %c0_i32_0 = arith.constant 0 : i32
    %c0_i32_1 = arith.constant 0 : i32
    return %c0_i32, %c0_i32_0 : i32, i32
  }
  func.func @transform_10(%arg0: i32) -> (i32, i32) {
    %c0_i32 = arith.constant 0 : i32
    %c0_i32_0 = arith.constant 0 : i32
    %c0_i32_1 = arith.constant 0 : i32
    return %c0_i32, %c0_i32_0 : i32, i32
  }
  func.func @transform_11(%arg0: i32) -> (i32, i32, i32) {
    %c0_i32 = arith.constant 0 : i32
    %c0_i32_0 = arith.constant 0 : i32
    %c0_i32_1 = arith.constant 0 : i32
    return %arg0, %c0_i32, %c0_i32_0 : i32, i32, i32
  }
}

</mosaic_0001>

<bundles_post_ra>
// kernel: tpu_custom_call.1
= control target key start
LH: loop header
LB: loop body
LE: loop exit
PB: predicated region body
PF: predicated region fallthrough
CT: control target
= control target key end

     0   :  { %16 = vsyncpa [#allocation3], 0  ;;  %s9113_s0 = inlined_call_operand.vmem [shape: bf16[2,24,128], index: 0, kind: input, shape index: {}]   ;;  %s9114_s1 = inlined_call_operand.vmem [shape: bf16[32,24], index: 1, kind: input, shape index: {}]   ;;  %s9115_s2 = inlined_call_operand.vmem [shape: f32[1,128], index: 2, kind: input, shape index: {}]   ;;  %s9116_s3 = inlined_call_operand.vmem [shape: f32[1,128], index: 3, kind: input, shape index: {}]   ;;  %s9117_s4 = inlined_call_operand.vmem [shape: bf16[16,48], index: 4, kind: input, shape index: {}]   ;;  %s9118_s5 = inlined_call_operand.vmem [shape: f32[1,128], index: 5, kind: input, shape index: {}]   ;;  %s9119_s6 = inlined_call_operand.vmem [shape: f32[1,128], index: 6, kind: input, shape index: {}]   ;;  %s9120_s7 = inlined_call_operand.vmem [shape: f32[16,1], index: 7, kind: input, shape index: {}]   ;;  %s9121_s8 = inlined_call_operand.vmem [shape: f32[3,1,128], index: 8, kind: input, shape index: {}]   ;;  %s9122_s9 = inlined_call_operand.vmem [shape: f32[128,8], index: 9, kind: input, shape index: {}]   ;;  %s9123_s10 = inlined_call_operand.vmem [shape: f32[8,128], index: 10, kind: input, shape index: {}]   ;;  %s9124_s11 = inlined_call_operand.hbm [shape: f32[2,16,128], index: 11, kind: output, shape index: {}]  }
   0x1   :  { %18 = vsyncpa [#allocation3 + $0x1], 0  ;;  %s8018_s17 = smov 0   ;;  %s8020_s18 = smov 0  }
   0x2   :  { %s8022_s19 = smov 0   ;;  %s8024_s20 = smov 0  }
   0x3 LB: > { %s8039_s21 = sadd.s32 4294967295, %s7948_s20   ;;  %s5458_s22 = sadd.s32 4294967294, %s7948_s20   ;;  %s7948_s20 = sphi %s8024_s20, %s9156_s20   ;;  %s7944_s19 = sphi %s8022_s19, %s9155_s19   ;;  %s7940_s18 = sphi %s8020_s18, %s9154_s18   ;;  %s7936_s17 = sphi %s8018_s17, %s9153_s17  }
   0x4   : > { %s8043_s23 = sadd.s32 1, %s7948_s20   ;;  %s267_s24 = sadd.s32 1, %s7944_s19 }
   0x5   : > { %s264_s25 = ssub.s32 %s7948_s20, %s8043_s23  ;;  %p277_p0 = scmp.ne.s32.totalorder %s7944_s19, %s7940_s18 }
   0x6   : > { %p265_p1 = scmp.eq.s32.totalorder %s264_s25, 0  ;;  %p278_p2 = scmp.eq.s32.totalorder %s8039_s21, 1 }
   0x7   : > { %p283_p3 = scmp.ne.s32.totalorder %s7940_s18, %s7936_s17  ;;  %p284_p4 = scmp.eq.s32.totalorder %s5458_s22, 1 }
   0x8   : > { %s8054_s26 = scalar_select %p265_p1, %s7944_s19, %s267_s24  }
   0x9   : > { %p8056_p5 = por %p278_p2, %p277_p0  ;;  %p8060_p6 = por %p284_p4, %p283_p3 }
   0xa   : > { %p5461_p7 = scmp.ge.s32.totalorder %s7948_s20, 1  ;;  %p340_p8 = scmp.lt.s32.totalorder %s7948_s20, 3 }
   0xc   : > { %p341_p9 = pnand %p5461_p7, %p340_p8 }
   0xd   : > { %p380_p10 = scmp.lt.s32.totalorder (!%p341_p9), %s8039_s21, 1  ;;  %v7875_v0 = vld [vmem:[%s9114_s1] sm:$0xff] (!%p341_p9)   ;;  %vm429_vm0 = vcmask (!%p341_p9), 195584   ;;  %v8079_v2 = vld [vmem:[%s9122_s9 + $0x8] sm:$0xff] (!%p341_p9)  ;;  %v8087_v5 = vld [vmem:[%s9122_s9 + $0x10] sm:$0xff] (!%p341_p9)  ;;  %vm436_vm1 = vcmask (!%p341_p9), 1043456  }
   0xe   : > { %344 = sbr.rel (%p341_p9) target bundleno = 1965 (0x7ad), region = 64  ;;  %v8074_v1 = vld [vmem:[%s9122_s9] sm:$0xff] (!%p341_p9)  ;;  %6001 = vmatprep.mubr.msk.bf16.mxu0 (!%p341_p9), %vm429_vm0, %v7875_v0  ;;  %v509_v4 = vand.u32 (!%p341_p9), 4294901760, %v8079_v2  ;;  %v8092_v6 = vld [vmem:[%s9122_s9 + $0x18] sm:$0xff] (!%p341_p9)  ;;  %v512_v8 = vand.u32 (!%p341_p9), 4294901760, %v8087_v5  ;;  %v8104_v10 = vld [vmem:[%s9122_s9 + $0x28] sm:$0xff] (!%p341_p9) }
   0xf   : > { %v506_v3 = vand.u32 (!%p341_p9), 4294901760, %v8074_v1  ;;  %v8097_v7 = vld [vmem:[%s9122_s9 + $0x20] sm:$0xff] (!%p341_p9)  ;;  %v515_v9 = vand.u32 (!%p341_p9), 4294901760, %v8092_v6  ;;  %v521_v13 = vand.u32 (!%p341_p9), 4294901760, %v8104_v10  ;;  %v8126_v15 = vld [vmem:[%s9122_s9 + $0x30] sm:$0xff] (!%p341_p9)  ;;  %v8131_v16 = vld [vmem:[%s9122_s9 + $0x38] sm:$0xff] (!%p341_p9) }
  0x10   : > { %v518_v12 = vand.u32 (!%p341_p9), 4294901760, %v8097_v7  ;;  %v524_v20 = vand.u32 (!%p341_p9), 4294901760, %v8126_v15  ;;  %v527_v21 = vand.u32 (!%p341_p9), 4294901760, %v8131_v16  ;;  %v8147_v22 = vld [vmem:[%s9122_s9 + $0x40] sm:$0xff] (!%p341_p9)  ;;  %v8152_v23 = vld [vmem:[%s9122_s9 + $0x48] sm:$0xff] (!%p341_p9)  ;;  %v396_v30 = vld [vmem:[%s9122_s9 + $0x50] sm:$0xff] (!%p341_p9)  ;;  %v8217_v41 = vsub.f32 (!%p341_p9), %v8079_v2, %v509_v4 }
  0x11   : > { %v8110_v11 = vpack.c.bf16 (!%p341_p9), %v509_v4, %v506_v3  ;;  %v8121_v14 = vpack.c.bf16 (!%p341_p9), %v515_v9, %v512_v8  ;;  %v530_v26 = vand.u32 (!%p341_p9), 4294901760, %v8147_v22  ;;  %v533_v27 = vand.u32 (!%p341_p9), 4294901760, %v8152_v23  ;;  %v7876_v28 = vld [vmem:[%s9114_s1 + $0x8] sm:$0xff] (!%p341_p9)   ;;  %v397_v31 = vld [vmem:[%s9122_s9 + $0x58] sm:$0xff] (!%p341_p9)  ;;  %v398_v35 = vld [vmem:[%s9122_s9 + $0x60] sm:$0xff] (!%p341_p9)  ;;  %s7952_s22 = smov (!%p341_p9), 127  }
  0x12   : > { %v8140_v19 = vpack.c.bf16 (!%p341_p9), %v521_v13, %v518_v12  ;;  %v8160_v25 = vpack.c.bf16 (!%p341_p9), %v527_v21, %v524_v20  ;;  %v536_v32 = vand.u32 (!%p341_p9), 4294901760, %v396_v30  ;;  %v539_v33 = vand.u32 (!%p341_p9), 4294901760, %v397_v31  ;;  %v399_v36 = vld [vmem:[%s9122_s9 + $0x68] sm:$0xff] (!%p341_p9)  ;;  %v400_v42 = vld [vmem:[%s9122_s9 + $0x70] sm:$0xff] (!%p341_p9)  ;;  %v401_v43 = vld [vmem:[%s9122_s9 + $0x78] sm:$0xff] (!%p341_p9)  ;;  %s377_s25 = sand.u32 (!%p341_p9), 1, %s7940_s18  }
  0x13   : > { %6976 = vmatprep.subr.bf16.mxu1 (!%p341_p9), %v8110_v11  ;;  %v8174_v29 = vpack.c.bf16 (!%p341_p9), %v533_v27, %v530_v26  ;;  %v542_v37 = vand.u32 (!%p341_p9), 4294901760, %v398_v35  ;;  %v545_v38 = vand.u32 (!%p341_p9), 4294901760, %v399_v36  ;;  %v8212_v40 = vsub.f32 (!%p341_p9), %v8074_v1, %v506_v3  ;;  %s5462_s29 = sshll.u32 (!%p341_p9), %s377_s25, 4  ;;  %s5484_s16 = sshll.u32 (!%p341_p9), %s8039_s21, 8 }
  0x14   : > { %6978 = vmatpush3.bf16.msra.mxu1 (!%p341_p9), %v8110_v11  ;;  %v8195_v34 = vpack.c.bf16 (!%p341_p9), %v539_v33, %v536_v32  ;;  %v548_v44 = vand.u32 (!%p341_p9), 4294901760, %v400_v42  ;;  %v551_v45 = vand.u32 (!%p341_p9), 4294901760, %v401_v43  ;;  %v9136_v47 = vand.u32 (!%p341_p9), 4294901760, %v8217_v41  ;;  %s9068_s13 = scalar_lea.hbm (!%p341_p9), %s9124_s11, %s5484_s16 }
  0x15   : > { %s381_s12 = scalar_select %p380_p10, %s8039_s21, 1  ;;  %6980 = vmatprep.subr.bf16.mxu1 %v8121_v14  ;;  %v8207_v39 = vpack.c.bf16 %v545_v38, %v542_v37  ;;  %v609_v46 = vand.u32 4294901760, %v8212_v40  ;;  %v8247_v54 = vsub.f32 %v396_v30, %v536_v32  ;;  %v8249_v55 = vsub.f32 %v397_v31, %v539_v33 }
  0x16   : > { %v8231_v48 = vpack.c.bf16 %v551_v45, %v548_v44  ;;  %v617_v50 = vsub.f32 %v8217_v41, %v9136_v47  ;;  %v8259_v60 = vsub.f32 %v398_v35, %v542_v37  ;;  %v8261_v61 = vsub.f32 %v399_v36, %v545_v38 }
  0x17   : > { %s7824_s14 = smul.u32 12, %s381_s12  ;;  %v610_v49 = vsub.f32 %v8212_v40, %v609_v46  ;;  %v9130_v56 = vand.u32 4294901760, %v8247_v54  ;;  %v9129_v57 = vand.u32 4294901760, %v8249_v55  ;;  %v8270_v4 = vsub.f32 %v400_v42, %v548_v44  ;;  %s379_s12 = scalar_lea.vmem [#allocation2], %s5462_s29 }
  0x18   : > { %6982 = vmatpush3.bf16.msra.mxu1 %v8121_v14  ;;  %v618_v52 = vand.u32 4294901760, %v617_v50  ;;  %v9128_v0 = vand.u32 4294901760, %v8259_v60  ;;  %v9127_v1 = vand.u32 4294901760, %v8261_v61  ;;  %v8291_v42 = vpack.c.bf16 %v8217_v41, %v8212_v40  ;;  %s7955_s29 = smov [#allocation2]  }
  0x19   : > { %s384_s24 = scalar_lea.vmem %s9113_s0, %s7824_s14  ;;  %6984 = vmatprep.subr.bf16.mxu1 %v8140_v19  ;;  %v611_v51 = vand.u32 4294901760, %v610_v49  ;;  %v680_v58 = vsub.f32 %v8247_v54, %v9130_v56  ;;  %v687_v59 = vsub.f32 %v8249_v55, %v9129_v57  ;;  %v8299_v44 = vpack.c.bf16 %v8261_v61, %v8259_v60  ;;  %s9072_s14 = scalar_lea.sflag [#allocation3], %s377_s25 }
  0x1a   : > { %v7873_v17 = vld [vmem:[%s384_s24] sm:$0xff]   ;;  %v7874_v18 = vld [vmem:[%s384_s24 + $0x8] ss:$0 sps:$4 sm:$0xff]   ;;  %v694_v3 = vsub.f32 %v8259_v60, %v9128_v0  ;;  %v8308_v49 = vsub.f32 %v8087_v5, %v512_v8  ;;  %v8313_v50 = vsub.f32 %v8092_v6, %v515_v9  ;;  %vm1887_vm2 = vcmask 64512   ;;  %s7953_s24 = smov 1   ;;  %s7890_s15 = sshll.u32 %s7955_s29, 4  ;;  %s7891_s15 = int_to_ptr.vmem [resolvable:$false] %s7890_s15 }
  0x1b   : > { %5997 = vmatprep.subr.bf16.mxu0 %v7873_v17  ;;  %v438_v24 = vsel %vm436_vm1, %v7874_v18, 0  ;;  %v8243_v53 = vpack.c.bf16 %v618_v52, %v611_v51  ;;  %v681_v62 = vand.u32 4294901760, %v680_v58  ;;  %v688_v63 = vand.u32 4294901760, %v687_v59  ;;  %s7892_s16 = scalar_lea.vmem %s7891_s15, 512 }
  0x1c   : > { %5998 = vmatpush3.bf16.msra.mxu0 %v7873_v17  ;;  %6986 = vmatpush3.bf16.msra.mxu1 %v8140_v19  ;;  %v8272_v17 = vsub.f32 %v401_v43, %v551_v45  ;;  %v8295_v43 = vpack.c.bf16 %v8249_v55, %v8247_v54  ;;  %v9134_v51 = vand.u32 4294901760, %v8308_v49  ;;  %v9133_v52 = vand.u32 4294901760, %v8313_v50 }
  0x1d   : > { %7823 = vmatprep.subr.msk.bf16.mxu0 %vm436_vm1, %v7874_v18  ;;  %6988 = vmatprep.subr.bf16.mxu1 %v8160_v25  ;;  %v8265_v2 = vpack.c.bf16 %v688_v63, %v681_v62  ;;  %v701_v18 = vsub.f32 %v8261_v61, %v9127_v1  ;;  %v8320_v58 = vsub.f32 %v8097_v7, %v518_v12  ;;  %vm7954_vm3 = vmmov 0  }
  0x1e   : > { %v9125_v30 = vand.u32 4294901760, %v8272_v17  ;;  %v8303_v45 = vpack.c.bf16 %v8272_v17, %v8270_v4  ;;  %v8325_v59 = vsub.f32 %v8104_v10, %v521_v13  ;;  %v624_v6 = vsub.f32 %v8308_v49, %v9134_v51 }
  0x1f   : > { %v702_v31 = vand.u32 4294901760, %v701_v18  ;;  %v631_v9 = vsub.f32 %v8313_v50, %v9133_v52  ;;  %v9132_v7 = vand.u32 4294901760, %v8320_v58  ;;  %v8356_v18 = vsub.f32 %v8131_v16, %v527_v21 }
  0x20   : > { %6000 = vmatpush3.bf16.msra.mxu0 %v438_v24  ;;  %6990 = vmatpush3.bf16.msra.mxu1 %v8160_v25  ;;  %v695_v24 = vand.u32 4294901760, %v694_v3  ;;  %v715_v33 = vsub.f32 %v8272_v17, %v9125_v30  ;;  %v9131_v12 = vand.u32 4294901760, %v8325_v59  ;;  %v8351_v3 = vsub.f32 %v8126_v15, %v524_v20 }
  0x21   : > { %7168 = vmatprep.subr.bf16.mxu0 %v8110_v11  ;;  %6992 = vmatprep.subr.bf16.mxu1 %v8174_v29  ;;  %v632_v15 = vand.u32 4294901760, %v631_v9  ;;  %v638_v20 = vsub.f32 %v8320_v58, %v9132_v7  ;;  %v8390_v1 = vsub.f32 %v8147_v22, %v530_v26  ;;  %vm2937_vm4 = vcmask 392192  }
  0x22   : > { %v8285_v35 = vpack.c.bf16 %v702_v31, %v695_v24  ;;  %v716_v37 = vand.u32 4294901760, %v715_v33  ;;  %v645_v16 = vsub.f32 %v8325_v59, %v9131_v12  ;;  %v9137_v9 = vand.u32 4294901760, %v8351_v3 }
  0x23   : > { %6002 = vmatmul.mubr.msk.bf16.vlgmr.msra.gmra.mrb[0].mxu0 %vm429_vm0, %v7876_v28  ;;  %v9126_v28 = vand.u32 4294901760, %v8270_v4  ;;  %v639_v22 = vand.u32 4294901760, %v638_v20 }
  0x24   : > { %7170 = vmatpush3.bf16.msra.mxu0 %v8110_v11  ;;  %6994 = vmatpush3.bf16.msra.mxu1 %v8174_v29  ;;  %v646_v52 = vand.u32 4294901760, %v645_v16  ;;  %v652_v51 = vsub.f32 %v8351_v3, %v9137_v9 }
  0x25   : > { %7172 = vmatprep.subr.bf16.mxu0 %v8121_v14  ;;  %6996 = vmatprep.subr.bf16.mxu1 %v8195_v34  ;;  %v708_v32 = vsub.f32 %v8270_v4, %v9126_v28  ;;  %v658_v28 = vand.u32 4294901760, %v8356_v18 }
  0x26   : > { %v8427_v9 = vpack.c.bf16 %v646_v52, %v639_v22 }
  0x27   : > { %v709_v36 = vand.u32 4294901760, %v708_v32 }
  0x28   : > { %7174 = vmatpush3.bf16.msra.mxu0 %v8121_v14  ;;  %6998 = vmatpush3.bf16.msra.mxu1 %v8195_v34 }
  0x29   : > { %7176 = vmatprep.subr.bf16.mxu0 %v8140_v19  ;;  %7000 = vmatprep.subr.bf16.mxu1 %v8207_v39  ;;  %v8287_v38 = vpack.c.bf16 %v716_v37, %v709_v36  ;;  %v625_v36 = vand.u32 4294901760, %v624_v6 }
  0x2b   : > { %v8405_v7 = vpack.c.bf16 %v632_v15, %v625_v36  ;;  %v659_v36 = vsub.f32 %v8356_v18, %v658_v28 }
  0x2c   : > { %7178 = vmatpush3.bf16.msra.mxu0 %v8140_v19  ;;  %7002 = vmatpush3.bf16.msra.mxu1 %v8207_v39 }
  0x2d   : > { %7180 = vmatprep.subr.bf16.mxu0 %v8160_v25  ;;  %7004 = vmatprep.subr.bf16.mxu1 %v8231_v48 }
  0x30   : > { %7182 = vmatpush3.bf16.msra.mxu0 %v8160_v25  ;;  %7006 = vmatpush3.bf16.msra.mxu1 %v8231_v48 }
  0x31   : > { %7184 = vmatprep.subr.bf16.mxu0 %v8174_v29  ;;  %7008 = vmatprep.subr.bf16.mxu1 %v8243_v53 }
  0x34   : > { %7186 = vmatpush3.bf16.msra.mxu0 %v8174_v29 }
  0x35   : > { %7188 = vmatprep.subr.bf16.mxu0 %v8195_v34 }
  0x38   : > { %7190 = vmatpush3.bf16.msra.mxu0 %v8195_v34 }
  0x39   : > { %7192 = vmatprep.subr.bf16.mxu0 %v8207_v39 }
  0x3c   : > { %7194 = vmatpush3.bf16.msra.mxu0 %v8207_v39 }
  0x3d   : > { %7196 = vmatprep.subr.bf16.mxu0 %v8231_v48 }
  0x40   : > { %7198 = vmatpush3.bf16.msra.mxu0 %v8231_v48 }
  0x41   : > { %7200 = vmatprep.subr.bf16.mxu0 %v8243_v53 }
  0xf6   : > { %v8327_v5 = vpop.f32.mrb[0].mxu0 }
  0xf7   : > { %v8329_v8 = vpop.f32.mrb[1].mxu0 }
  0xf8   : > { %v8340_v62 = vand.u32 4294901760, %v8329_v8  ;;  %v1189_v10 = vmul.f32 %v8329_v8, %v8329_v8  ;;  %v8344_v13 = vpop.f32.mrb[2].mxu0 }
  0xf9   : > { %v8346_v63 = vpop.f32.mrb[3].mxu0 }
  0xfa   : > { %v8358_v24 = vand.u32 4294901760, %v1189_v10  ;;  %v8361_v31 = vand.u32 4294901760, %v8346_v63  ;;  %v1190_v32 = vmul.f32 %v8346_v63, %v8346_v63  ;;  %v8367_v33 = vsub.f32 %v8329_v8, %v8340_v62 }
  0xfc   : > { %v8376_v21 = vsub.f32 %v1189_v10, %v8358_v24  ;;  %v8380_v37 = vsub.f32 %v8346_v63, %v8361_v31  ;;  %v8382_v30 = vand.u32 4294901760, %v1190_v32  ;;  %v588_v6 = vand.u32 4294901760, %v8367_v33 }
  0xfd   : > { %v8395_v10 = vsub.f32 %v8152_v23, %v533_v27 }
  0xfe   : > { %v8398_v0 = vsub.f32 %v1190_v32, %v8382_v30  ;;  %v589_v57 = vsub.f32 %v8367_v33, %v588_v6  ;;  %v9135_v56 = vand.u32 4294901760, %v8380_v37  ;;  %v1274_v12 = vand.u32 4294901760, %v8376_v21 }
  0xff   : > { %v672_v47 = vand.u32 4294901760, %v8395_v10  ;;  %v9143_v40 = vand.u32 4294901760, %v8380_v37 }
 0x100   : > { %v590_v26 = vand.u32 4294901760, %v589_v57  ;;  %v599_v23 = vsub.f32 %v8380_v37, %v9135_v56  ;;  %v1275_v27 = vsub.f32 %v8376_v21, %v1274_v12  ;;  %v1284_v32 = vand.u32 4294901760, %v8398_v0 }
 0x101   : > { %v665_v57 = vand.u32 4294901760, %v8390_v1 }
 0x102   : > { %6037 = vmatprep.mubr.f32.mxu1 %v590_v26  ;;  %v600_v15 = vand.u32 4294901760, %v599_v23  ;;  %v1276_v20 = vand.u32 4294901760, %v1275_v27  ;;  %v1285_v56 = vsub.f32 %v8398_v0, %v1284_v32  ;;  %v653_v26 = vand.u32 4294901760, %v652_v51 }
 0x103   : > { %v660_v23 = vand.u32 4294901760, %v659_v36  ;;  %v666_v27 = vsub.f32 %v8390_v1, %v665_v57  ;;  %v8471_v36 = vpack.c.bf16 %v8313_v50, %v8308_v49 }
 0x104   : > { %6038 = vmatmul.mubr.f32.vlgmr.msra.gmra.mrb[0].mxu1 %v600_v15  ;;  %6247 = vmatprep.mubr.f32.mxu0 %v1276_v20  ;;  %v1286_v16 = vand.u32 4294901760, %v1285_v56  ;;  %v673_v15 = vsub.f32 %v8395_v10, %v672_v47  ;;  %v8482_v20 = vpack.c.bf16 %v8325_v59, %v8320_v58 }
 0x105   : > { %7010 = vmatpush3.bf16.msra.mxu1 %v8243_v53  ;;  %6072 = vmatprep.mubr.f32.mxu1 %v8340_v62  ;;  %v8441_v56 = vpack.c.bf16 %v660_v23, %v653_v26  ;;  %v667_v51 = vand.u32 4294901760, %v666_v27  ;;  %v8499_v26 = vpack.c.bf16 %v8395_v10, %v8390_v1  ;;  %v9150_v1 = vand.u32 4294901760, %v8261_v61 }
 0x106   : > { %6248 = vmatmul.mubr.f32.vlgmr.msra.gmra.mrb[4].mxu0 %v1286_v16  ;;  %7012 = vmatprep.subr.bf16.mxu1 %v8405_v7  ;;  %v674_v52 = vand.u32 4294901760, %v673_v15  ;;  %v8491_v16 = vpack.c.bf16 %v8356_v18, %v8351_v3 }
 0x107   : > { %7202 = vmatpush3.bf16.msra.mxu0 %v8243_v53  ;;  %6282 = vmatprep.mubr.f32.mxu0 %v8358_v24 }
 0x108   : > { %7204 = vmatprep.subr.bf16.mxu0 %v8405_v7  ;;  %v8447_v22 = vpack.c.bf16 %v674_v52, %v667_v51 }
 0x109   : > { %7014 = vmatpush3.bf16.msra.mxu1 %v8405_v7 }
 0x10a   : > { %7016 = vmatprep.subr.bf16.mxu1 %v8427_v9 }
 0x10b   : > { %7206 = vmatpush3.bf16.msra.mxu0 %v8405_v7 }
 0x10c   : > { %7208 = vmatprep.subr.bf16.mxu0 %v8427_v9 }
 0x10d   : > { %7018 = vmatpush3.bf16.msra.mxu1 %v8427_v9 }
 0x10e   : > { %7020 = vmatprep.subr.bf16.mxu1 %v8441_v56 }
 0x10f   : > { %7210 = vmatpush3.bf16.msra.mxu0 %v8427_v9 }
 0x110   : > { %7212 = vmatprep.subr.bf16.mxu0 %v8441_v56 }
 0x111   : > { %7022 = vmatpush3.bf16.msra.mxu1 %v8441_v56 }
 0x112   : > { %7024 = vmatprep.subr.bf16.mxu1 %v8447_v22 }
 0x113   : > { %7214 = vmatpush3.bf16.msra.mxu0 %v8441_v56 }
 0x114   : > { %7216 = vmatprep.subr.bf16.mxu0 %v8447_v22 }
 0x115   : > { %7026 = vmatpush3.bf16.msra.mxu1 %v8447_v22 }
 0x116   : > { %7028 = vmatprep.subr.bf16.mxu1 %v8265_v2 }
 0x117   : > { %7218 = vmatpush3.bf16.msra.mxu0 %v8447_v22 }
 0x118   : > { %7220 = vmatprep.subr.bf16.mxu0 %v8265_v2 }
 0x119   : > { %7030 = vmatpush3.bf16.msra.mxu1 %v8265_v2 }
 0x11a   : > { %7032 = vmatprep.subr.bf16.mxu1 %v8285_v35 }
 0x11b   : > { %7222 = vmatpush3.bf16.msra.mxu0 %v8265_v2 }
 0x11c   : > { %7224 = vmatprep.subr.bf16.mxu0 %v8285_v35 }
 0x11d   : > { %7034 = vmatpush3.bf16.msra.mxu1 %v8285_v35 }
 0x11e   : > { %7036 = vmatprep.subr.bf16.mxu1 %v8287_v38 }
 0x11f   : > { %7226 = vmatpush3.bf16.msra.mxu0 %v8285_v35 }
 0x120   : > { %7228 = vmatprep.subr.bf16.mxu0 %v8287_v38 }
 0x121   : > { %7038 = vmatpush3.bf16.msra.mxu1 %v8287_v38 }
 0x122   : > { %7040 = vmatprep.subr.bf16.mxu1 %v8291_v42 }
 0x123   : > { %7230 = vmatpush3.bf16.msra.mxu0 %v8287_v38 }
 0x124   : > { %6073 = vmatmul.mubr.f32.vlgmr.msra.gmra.mrb[0].mxu1 %v8361_v31  ;;  %7232 = vmatprep.subr.bf16.mxu0 %v8291_v42 }
 0x125   : > { %7042 = vmatpush3.bf16.msra.mxu1 %v8291_v42  ;;  %6107 = vmatprep.mubr.f32.mxu1 %v8367_v33 }
 0x126   : > { %6283 = vmatmul.mubr.f32.vlgmr.msra.gmra.mrb[4].mxu0 %v8382_v30  ;;  %7044 = vmatprep.subr.bf16.mxu1 %v8471_v36 }
 0x127   : > { %7234 = vmatpush3.bf16.msra.mxu0 %v8291_v42  ;;  %6317 = vmatprep.mubr.f32.mxu0 %v8376_v21  ;;  %v9141_v21 = vand.u32 4294901760, %v8308_v49 }
 0x128   : > { %7236 = vmatprep.subr.bf16.mxu0 %v8471_v36 }
 0x129   : > { %7046 = vmatpush3.bf16.msra.mxu1 %v8471_v36 }
 0x12a   : > { %7048 = vmatprep.subr.bf16.mxu1 %v8482_v20 }
 0x12b   : > { %7238 = vmatpush3.bf16.msra.mxu0 %v8471_v36 }
 0x12c   : > { %7240 = vmatprep.subr.bf16.mxu0 %v8482_v20 }
 0x12d   : > { %7050 = vmatpush3.bf16.msra.mxu1 %v8482_v20 }
 0x12e   : > { %7052 = vmatprep.subr.bf16.mxu1 %v8491_v16 }
 0x12f   : > { %7242 = vmatpush3.bf16.msra.mxu0 %v8482_v20 }
 0x130   : > { %7244 = vmatprep.subr.bf16.mxu0 %v8491_v16 }
 0x131   : > { %7054 = vmatpush3.bf16.msra.mxu1 %v8491_v16 }
 0x132   : > { %7056 = vmatprep.subr.bf16.mxu1 %v8499_v26 }
 0x133   : > { %7246 = vmatpush3.bf16.msra.mxu0 %v8491_v16 }
 0x134   : > { %7248 = vmatprep.subr.bf16.mxu0 %v8499_v26 }
 0x135   : > { %7058 = vmatpush3.bf16.msra.mxu1 %v8499_v26 }
 0x136   : > { %7060 = vmatprep.subr.bf16.mxu1 %v8295_v43 }
 0x137   : > { %7250 = vmatpush3.bf16.msra.mxu0 %v8499_v26 }
 0x138   : > { %7252 = vmatprep.subr.bf16.mxu0 %v8295_v43 }
 0x139   : > { %7062 = vmatpush3.bf16.msra.mxu1 %v8295_v43 }
 0x13a   : > { %7064 = vmatprep.subr.bf16.mxu1 %v8299_v44 }
 0x13b   : > { %7254 = vmatpush3.bf16.msra.mxu0 %v8295_v43 }
 0x13c   : > { %7256 = vmatprep.subr.bf16.mxu0 %v8299_v44 }
 0x13d   : > { %7066 = vmatpush3.bf16.msra.mxu1 %v8299_v44 }
 0x13e   : > { %7068 = vmatprep.subr.bf16.mxu1 %v8303_v45 }
 0x13f   : > { %7258 = vmatpush3.bf16.msra.mxu0 %v8299_v44 }
 0x140   : > { %7260 = vmatprep.subr.bf16.mxu0 %v8303_v45 }
 0x141   : > { %7070 = vmatpush3.bf16.msra.mxu1 %v8303_v45 }
 0x142   : > { %7072 = vmatprep.subr.bf16.mxu1 %v8110_v11 }
 0x143   : > { %7262 = vmatpush3.bf16.msra.mxu0 %v8303_v45 }
 0x144   : > { %6108 = vmatmul.mubr.f32.vlgmr.msra.gmra.mrb[0].mxu1 %v8380_v37  ;;  %7264 = vmatprep.subr.bf16.mxu0 %v8110_v11 }
 0x145   : > { %7074 = vmatpush3.bf16.msra.mxu1 %v8110_v11  ;;  %6142 = vmatprep.mubr.f32.mxu1 %v588_v6  ;;  %v9142_v6 = vand.u32 4294901760, %v8313_v50 }
 0x146   : > { %6318 = vmatmul.mubr.f32.vlgmr.msra.gmra.mrb[4].mxu0 %v8398_v0  ;;  %7076 = vmatprep.subr.bf16.mxu1 %v8121_v14  ;;  %v9146_v0 = vand.u32 4294901760, %v8351_v3 }
 0x147   : > { %7266 = vmatpush3.bf16.msra.mxu0 %v8110_v11  ;;  %6352 = vmatprep.mubr.f32.mxu0 %v1274_v12  ;;  %v9140_v12 = vand.u32 4294901760, %v8217_v41  ;;  %v8569_v23 = vpack.c.bf16 %v9142_v6, %v9141_v21  ;;  %v9144_v41 = vand.u32 4294901760, %v8320_v58  ;;  %v8605_v58 = vpack.c.bf16 %v672_v47, %v665_v57 }
 0x148   : > { %7268 = vmatprep.subr.bf16.mxu0 %v8121_v14  ;;  %v8595_v50 = vpack.c.bf16 %v658_v28, %v9146_v0  ;;  %v9147_v28 = vand.u32 4294901760, %v8247_v54  ;;  %v9149_v47 = vand.u32 4294901760, %v8259_v60  ;;  %v9151_v54 = vand.u32 4294901760, %v8270_v4  ;;  %v402_v60 = vld [vmem:[%s9123_s10] sm:$0xff] }
 0x149   : > { %7078 = vmatpush3.bf16.msra.mxu1 %v8121_v14  ;;  %v8559_v33 = vpack.c.bf16 %v9140_v12, %v609_v46  ;;  %v9145_v46 = vand.u32 4294901760, %v8325_v59  ;;  %v9148_v59 = vand.u32 4294901760, %v8249_v55  ;;  %v9152_v55 = vand.u32 4294901760, %v8272_v17 }
 0x14a   : > { %7080 = vmatprep.subr.bf16.mxu1 %v8140_v19  ;;  %v8625_v18 = vpack.c.bf16 %v9150_v1, %v9149_v47  ;;  %v8686_v61 = vand.u32 4294901760, %v402_v60 }
 0x14b   : > { %7270 = vmatpush3.bf16.msra.mxu0 %v8121_v14  ;;  %v8584_v49 = vpack.c.bf16 %v9145_v46, %v9144_v41  ;;  %v8615_v3 = vpack.c.bf16 %v9148_v59, %v9147_v28  ;;  %v8635_v37 = vpack.c.bf16 %v9152_v55, %v9151_v54 }
 0x14c   : > { %7272 = vmatprep.subr.bf16.mxu0 %v8140_v19  ;;  %v8692_v4 = vsub.f32 %v402_v60, %v8686_v61 }
 0x14d   : > { %7082 = vmatpush3.bf16.msra.mxu1 %v8140_v19 }
 0x14e   : > { %7084 = vmatprep.subr.bf16.mxu1 %v8160_v25  ;;  %v8696_v17 = vand.u32 4294901760, %v8692_v4 }
 0x14f   : > { %7274 = vmatpush3.bf16.msra.mxu0 %v8140_v19 }
 0x150   : > { %7276 = vmatprep.subr.bf16.mxu0 %v8160_v25 }
 0x151   : > { %7086 = vmatpush3.bf16.msra.mxu1 %v8160_v25 }
 0x152   : > { %7088 = vmatprep.subr.bf16.mxu1 %v8174_v29 }
 0x153   : > { %7278 = vmatpush3.bf16.msra.mxu0 %v8160_v25 }
 0x154   : > { %7280 = vmatprep.subr.bf16.mxu0 %v8174_v29 }
 0x155   : > { %7090 = vmatpush3.bf16.msra.mxu1 %v8174_v29 }
 0x156   : > { %7092 = vmatprep.subr.bf16.mxu1 %v8195_v34 }
 0x157   : > { %7282 = vmatpush3.bf16.msra.mxu0 %v8174_v29 }
 0x158   : > { %7284 = vmatprep.subr.bf16.mxu0 %v8195_v34 }
 0x159   : > { %7094 = vmatpush3.bf16.msra.mxu1 %v8195_v34 }
 0x15a   : > { %7096 = vmatprep.subr.bf16.mxu1 %v8207_v39 }
 0x15b   : > { %7286 = vmatpush3.bf16.msra.mxu0 %v8195_v34 }
 0x15c   : > { %7288 = vmatprep.subr.bf16.mxu0 %v8207_v39 }
 0x15d   : > { %7098 = vmatpush3.bf16.msra.mxu1 %v8207_v39 }
 0x15e   : > { %7100 = vmatprep.subr.bf16.mxu1 %v8231_v48 }
 0x15f   : > { %7290 = vmatpush3.bf16.msra.mxu0 %v8207_v39 }
 0x160   : > { %7292 = vmatprep.subr.bf16.mxu0 %v8231_v48 }
 0x161   : > { %7102 = vmatpush3.bf16.msra.mxu1 %v8231_v48 }
 0x162   : > { %7104 = vmatprep.subr.bf16.mxu1 %v8559_v33 }
 0x163   : > { %7294 = vmatpush3.bf16.msra.mxu0 %v8231_v48 }
 0x164   : > { %6143 = vmatmul.mubr.f32.vlgmr.msra.gmra.mrb[0].mxu1 %v9143_v40  ;;  %7296 = vmatprep.subr.bf16.mxu0 %v8559_v33 }
 0x165   : > { %7106 = vmatpush3.bf16.msra.mxu1 %v8559_v33  ;;  %6177 = vmatprep.mubr.f32.mxu1 %v8340_v62 }
 0x166   : > { %6353 = vmatmul.mubr.f32.vlgmr.msra.gmra.mrb[4].mxu0 %v1284_v32  ;;  %7108 = vmatprep.subr.bf16.mxu1 %v8569_v23 }
 0x167   : > { %7298 = vmatpush3.bf16.msra.mxu0 %v8559_v33  ;;  %6387 = vmatprep.mubr.f32.mxu0 %v8358_v24 }
 0x168   : > { %7300 = vmatprep.subr.bf16.mxu0 %v8569_v23 }
 0x169   : > { %7110 = vmatpush3.bf16.msra.mxu1 %v8569_v23 }
 0x16a   : > { %7112 = vmatprep.subr.bf16.mxu1 %v8584_v49 }
 0x16b   : > { %7302 = vmatpush3.bf16.msra.mxu0 %v8569_v23 }
 0x16c   : > { %7304 = vmatprep.subr.bf16.mxu0 %v8584_v49 }
 0x16d   : > { %7114 = vmatpush3.bf16.msra.mxu1 %v8584_v49 }
 0x16e   : > { %7116 = vmatprep.subr.bf16.mxu1 %v8595_v50 }
 0x16f   : > { %7306 = vmatpush3.bf16.msra.mxu0 %v8584_v49 }
 0x170   : > { %7308 = vmatprep.subr.bf16.mxu0 %v8595_v50 }
 0x171   : > { %7118 = vmatpush3.bf16.msra.mxu1 %v8595_v50 }
 0x172   : > { %7120 = vmatprep.subr.bf16.mxu1 %v8605_v58 }
 0x173   : > { %7310 = vmatpush3.bf16.msra.mxu0 %v8595_v50 }
 0x174   : > { %7312 = vmatprep.subr.bf16.mxu0 %v8605_v58 }
 0x175   : > { %7122 = vmatpush3.bf16.msra.mxu1 %v8605_v58 }
 0x176   : > { %7124 = vmatprep.subr.bf16.mxu1 %v8615_v3 }
 0x177   : > { %7314 = vmatpush3.bf16.msra.mxu0 %v8605_v58 }
 0x178   : > { %7316 = vmatprep.subr.bf16.mxu0 %v8615_v3 }
 0x179   : > { %7126 = vmatpush3.bf16.msra.mxu1 %v8615_v3 }
 0x17a   : > { %7128 = vmatprep.subr.bf16.mxu1 %v8625_v18 }
 0x17b   : > { %7318 = vmatpush3.bf16.msra.mxu0 %v8615_v3 }
 0x17c   : > { %7320 = vmatprep.subr.bf16.mxu0 %v8625_v18 }
 0x17d   : > { %7130 = vmatpush3.bf16.msra.mxu1 %v8625_v18 }
 0x17e   : > { %7132 = vmatprep.subr.bf16.mxu1 %v8635_v37 }
 0x17f   : > { %7322 = vmatpush3.bf16.msra.mxu0 %v8625_v18 }
 0x180   : > { %7324 = vmatprep.subr.bf16.mxu0 %v8635_v37 }
 0x181   : > { %7134 = vmatpush3.bf16.msra.mxu1 %v8635_v37 }
 0x182   : > { %7136 = vmatprep.subr.bf16.mxu1 %v8110_v11 }
 0x183   : > { %7326 = vmatpush3.bf16.msra.mxu0 %v8635_v37 }
 0x184   : > { %6178 = vmatmul.mubr.f32.vlgmr.msra.gmra.mrb[0].mxu1 %v8361_v31  ;;  %7328 = vmatprep.subr.bf16.mxu0 %v8110_v11 }
 0x185   : > { %7138 = vmatpush3.bf16.msra.mxu1 %v8110_v11  ;;  %6212 = vmatprep.mubr.f32.mxu1 %v8340_v62 }
 0x186   : > { %6388 = vmatmul.mubr.f32.vlgmr.msra.gmra.mrb[4].mxu0 %v8382_v30  ;;  %7140 = vmatprep.subr.bf16.mxu1 %v8121_v14 }
 0x187   : > { %7330 = vmatpush3.bf16.msra.mxu0 %v8110_v11  ;;  %6422 = vmatprep.mubr.f32.mxu0 %v8358_v24 }
 0x188   : > { %7332 = vmatprep.subr.bf16.mxu0 %v8121_v14 }
 0x189   : > { %7142 = vmatpush3.bf16.msra.mxu1 %v8121_v14 }
 0x18a   : > { %7144 = vmatprep.subr.bf16.mxu1 %v8140_v19 }
 0x18b   : > { %7334 = vmatpush3.bf16.msra.mxu0 %v8121_v14 }
 0x18c   : > { %7336 = vmatprep.subr.bf16.mxu0 %v8140_v19 }
 0x18d   : > { %7146 = vmatpush3.bf16.msra.mxu1 %v8140_v19 }
 0x18e   : > { %7148 = vmatprep.subr.bf16.mxu1 %v8160_v25 }
 0x18f   : > { %7338 = vmatpush3.bf16.msra.mxu0 %v8140_v19 }
 0x190   : > { %7340 = vmatprep.subr.bf16.mxu0 %v8160_v25 }
 0x191   : > { %7150 = vmatpush3.bf16.msra.mxu1 %v8160_v25 }
 0x192   : > { %7152 = vmatprep.subr.bf16.mxu1 %v8174_v29 }
 0x193   : > { %7342 = vmatpush3.bf16.msra.mxu0 %v8160_v25 }
 0x194   : > { %7344 = vmatprep.subr.bf16.mxu0 %v8174_v29 }
 0x195   : > { %7154 = vmatpush3.bf16.msra.mxu1 %v8174_v29 }
 0x196   : > { %7156 = vmatprep.subr.bf16.mxu1 %v8195_v34 }
 0x197   : > { %7346 = vmatpush3.bf16.msra.mxu0 %v8174_v29 }
 0x198   : > { %7348 = vmatprep.subr.bf16.mxu0 %v8195_v34 }
 0x199   : > { %7158 = vmatpush3.bf16.msra.mxu1 %v8195_v34 }
 0x19a   : > { %7160 = vmatprep.subr.bf16.mxu1 %v8207_v39 }
 0x19b   : > { %7350 = vmatpush3.bf16.msra.mxu0 %v8195_v34 }
 0x19c   : > { %7352 = vmatprep.subr.bf16.mxu0 %v8207_v39 }
 0x19d   : > { %7162 = vmatpush3.bf16.msra.mxu1 %v8207_v39 }
 0x19e   : > { %7164 = vmatprep.subr.bf16.mxu1 %v8231_v48 }
 0x19f   : > { %7354 = vmatpush3.bf16.msra.mxu0 %v8207_v39 }
 0x1a0   : > { %7356 = vmatprep.subr.bf16.mxu0 %v8231_v48 }
 0x1a1   : > { %7166 = vmatpush3.bf16.msra.mxu1 %v8231_v48 }
 0x1a2   : > { %6425 = vmatprep.subr.mxu1 %v8686_v61 }
 0x1a3   : > { %7358 = vmatpush3.bf16.msra.mxu0 %v8231_v48 }
 0x1a4   : > { %6213 = vmatmul.mubr.f32.vlgmr.msra.gmra.mrb[0].mxu1 %v8361_v31  ;;  %6455 = vmatprep.subr.mxu0 %v8686_v61 }
 0x1a5   : > { %6426 = vmatpush3.msra.mxu1 %v8686_v61 }
 0x1a6   : > { %6423 = vmatmul.mubr.f32.vlgmr.msra.gmra.mrb[4].mxu0 %v8382_v30  ;;  %v1984_v30 = vsub.f32 %v8692_v4, %v8696_v17 }
 0x1a7   : > { %6456 = vmatpush3.msra.mxu0 %v8686_v61 }
 0x1a8   : > { %v8700_v62 = vand.u32 4294901760, %v1984_v30 }
 0x1aa   : > { %6430 = vmatprep.subr.mxu1 %v8700_v62  ;;  %6460 = vmatprep.subr.mxu0 %v8700_v62 }
 0x277   : > { %v6214_v24 = vpop.f32.mrb[0].mxu1 }
 0x278   : > { %v1876_v31 = vmul.f32 0.0625, %v6214_v24  ;;  %v1179_v10 = vpop.f32.mrb[1].mxu1 }
 0x279   : > { %v1875_v32 = vmul.f32 0.0625, %v1179_v10  ;;  %v6424_v57 = vpop.f32.mrb[4].mxu0 }
 0x27a   : > { %v1880_v27 = vmul.f32 %v1876_v31, %v1876_v31  ;;  %v1892_v15 = vsel %vm1887_vm2, %v1876_v31, 0  ;;  %v1878_v51 = vmul.f32 0.0625, %v6424_v57  ;;  %v1865_v52 = vpop.f32.mrb[5].mxu0 }
 0x27b   : > { %v8705_v12 = vand.u32 4294901760, %v1892_v15  ;;  %v1879_v21 = vmul.f32 %v1875_v32, %v1875_v32  ;;  %v1889_v6 = vsel %vm1887_vm2, %v1875_v32, 0  ;;  %v1877_v40 = vmul.f32 0.0625, %v1865_v52 }
 0x27c   : > { %v1960_v41 = vand.u32 4294901760, %v1889_v6  ;;  %v1882_v46 = vsub.f32 %v1878_v51, %v1880_v27 }
 0x27d   : > { %v1971_v0 = vsub.f32 %v1892_v15, %v8705_v12  ;;  %v1881_v28 = vsub.f32 %v1877_v40, %v1879_v21 }
 0x27e   : > { %v1961_v59 = vsub.f32 %v1889_v6, %v1960_v41  ;;  %v1884_v47 = vadd.f32 1e-05, %v1882_v46 }
 0x27f   : > { %v1972_v1 = vand.u32 4294901760, %v1971_v0  ;;  %v1883_v54 = vadd.f32 1e-05, %v1881_v28 }
 0x280   : > { %7878 = vrsqrt.f32 %v1884_v47  ;;  %v1962_v55 = vand.u32 4294901760, %v1961_v59 }
 0x281   : > { %7880 = vrsqrt.f32 %v1883_v54  ;;  %v1973_v60 = vsub.f32 %v1971_v0, %v1972_v1 }
 0x282   : > { %v1963_v30 = vsub.f32 %v1961_v59, %v1962_v55 }
 0x283   : > { %v1974_v31 = vand.u32 4294901760, %v1973_v60 }
 0x284   : > { %v1964_v24 = vand.u32 4294901760, %v1963_v30 }
 0x286   : > { %6427 = vmatprep.mubr.f32.mxu1 %v1964_v24 }
 0x287   : > { %6428 = vmatmul.mubr.f32.vlgmr.msra.gmra.mrb[2].mxu1 %v1974_v31 }
 0x288   : > { %6432 = vmatprep.mubr.f32.mxu1 %v1960_v41  ;;  %6431 = vmatpush3.msra.mxu1 %v8700_v62 }
 0x289   : > { %6435 = vmatprep.subr.mxu1 %v8692_v4 }
 0x28a   : > { %v7879_v10 = vpop.eup %7878 }
 0x28b   : > { %v7881_v32 = vpop.eup %7880  ;;  %v2387_v57 = vsel %vm1887_vm2, %v7879_v10, 0  ;;  %v5471_v10 = vld [vmem:[%s9116_s3] ss:$0 sm:$0xff] }
 0x28c   : > { %v2384_v27 = vsel %vm1887_vm2, %v7881_v32, 0  ;;  %v2465_v15 = vand.u32 4294901760, %v2387_v57 }
 0x28d   : > { %v2455_v51 = vand.u32 4294901760, %v2384_v27 }
 0x28e   : > { %v2466_v52 = vsub.f32 %v2387_v57, %v2465_v15 }
 0x28f   : > { %6433 = vmatmul.mubr.f32.vlgmr.msra.gmra.mrb[2].mxu1 %v8705_v12  ;;  %v2456_v21 = vsub.f32 %v2384_v27, %v2455_v51  ;;  %v7951_v27 = vmov 0.0  }
 0x290   : > { %6437 = vmatprep.mubr.f32.mxu1 %v1961_v59  ;;  %6436 = vmatpush3.msra.mxu1 %v8692_v4  ;;  %v2467_v6 = vand.u32 4294901760, %v2466_v52 }
 0x291   : > { %v2457_v40 = vand.u32 4294901760, %v2456_v21  ;;  %6440 = vmatprep.subr.mxu1 %v8686_v61 }
 0x292   : > { %v2468_v46 = vsub.f32 %v2466_v52, %v2467_v6 }
 0x293   : > { %v2458_v28 = vsub.f32 %v2456_v21, %v2457_v40 }
 0x294   : > { %v2469_v54 = vand.u32 4294901760, %v2468_v46 }
 0x295   : > { %v2459_v47 = vand.u32 4294901760, %v2458_v28  ;;  %v5472_v28 = vld [vmem:[%s9121_s8] ss:$0 sm:$0xff] }
 0x297   : > { %6438 = vmatmul.mubr.f32.vlgmr.msra.gmra.mrb[2].mxu1 %v1971_v0  ;;  %6457 = vmatprep.mubr.f32.mxu0 %v2459_v47 }
 0x298   : > { %6442 = vmatprep.mubr.f32.mxu1 %v1962_v55  ;;  %6458 = vmatmul.mubr.f32.vlgmr.msra.gmra.mrb[6].mxu0 %v2469_v54  ;;  %v5470_v55 = vld [vmem:[%s9115_s2] ss:$0 sm:$0xff] }
 0x299   : > { %6461 = vmatpush3.msra.mxu0 %v8700_v62  ;;  %6462 = vmatprep.mubr.f32.mxu0 %v2455_v51 }
 0x29a   : > { %6441 = vmatpush3.msra.mxu1 %v8686_v61  ;;  %6465 = vmatprep.subr.mxu0 %v8692_v4 }
 0x29b   : > { %6445 = vmatprep.subr.mxu1 %v8696_v17 }
 0x29f   : > { %6443 = vmatmul.mubr.f32.vlgmr.msra.gmra.mrb[2].mxu1 %v1972_v1 }
 0x2a0   : > { %6447 = vmatprep.mubr.f32.mxu1 %v1960_v41  ;;  %6463 = vmatmul.mubr.f32.vlgmr.msra.gmra.mrb[6].mxu0 %v2465_v15 }
 0x2a1   : > { %6466 = vmatpush3.msra.mxu0 %v8692_v4  ;;  %6467 = vmatprep.mubr.f32.mxu0 %v2456_v21  ;;  %v490_v21 = vld [vmem:[%s9120_s7 + $0x8] sm:$0xff] }
 0x2a2   : > { %6446 = vmatpush3.msra.mxu1 %v8696_v17  ;;  %6470 = vmatprep.subr.mxu0 %v8686_v61 }
 0x2a3   : > { %6450 = vmatprep.subr.mxu1 %v8686_v61 }
 0x2a7   : > { %6448 = vmatmul.mubr.f32.vlgmr.msra.gmra.mrb[2].mxu1 %v8705_v12 }
 0x2a8   : > { %6452 = vmatprep.mubr.f32.mxu1 %v1960_v41  ;;  %6468 = vmatmul.mubr.f32.vlgmr.msra.gmra.mrb[6].mxu0 %v2466_v52 }
 0x2a9   : > { %6471 = vmatpush3.msra.mxu0 %v8686_v61  ;;  %6472 = vmatprep.mubr.f32.mxu0 %v2457_v40 }
 0x2aa   : > { %6451 = vmatpush3.msra.mxu1 %v8686_v61  ;;  %6475 = vmatprep.subr.mxu0 %v8696_v17 }
 0x2ab   : > { %6485 = vmatprep.subr.bf16.mxu1 %v7951_v27 }
 0x2af   : > { %6453 = vmatmul.mubr.f32.vlgmr.msra.gmra.mrb[2].mxu1 %v8705_v12  ;;  %v7950_v12 = vmov 0  }
 0x2b0   : > { %6473 = vmatmul.mubr.f32.vlgmr.msra.gmra.mrb[6].mxu0 %v2467_v6  ;;  %7872 = vset.pattern.permute.xlu1 %v7950_v12  ;;  %v489_v6 = vld [vmem:[%s9120_s7] sm:$0xff] }
 0x2b1   : > { %6476 = vmatpush3.msra.mxu0 %v8696_v17  ;;  %6477 = vmatprep.mubr.f32.mxu0 %v2455_v51 }
 0x2b2   : > { %6480 = vmatprep.subr.mxu0 %v8686_v61  ;;  %7871 = vset.pattern.permute.xlu0 %v7950_v12 }
 0x2b3   : > { %6491 = vmatprep.mubr.msk.bf16.mxu1 %vm7954_vm3, %v7951_v27 }
 0x2b8   : > { %6478 = vmatmul.mubr.f32.vlgmr.msra.gmra.mrb[6].mxu0 %v2465_v15 }
 0x2b9   : > { %6481 = vmatpush3.msra.mxu0 %v8686_v61  ;;  %6482 = vmatprep.mubr.f32.mxu0 %v2455_v51 }
 0x2ba   : > { %7360 = vmatprep.subr.bf16.mxu0 %v8110_v11 }
 0x2c0   : > { %6483 = vmatmul.mubr.f32.vlgmr.msra.gmra.mrb[6].mxu0 %v2465_v15 }
 0x2c1   : > { %7362 = vmatpush3.bf16.msra.mxu0 %v8110_v11 }
 0x2c2   : > { %7364 = vmatprep.subr.bf16.mxu0 %v8121_v14 }
 0x2c5   : > { %7366 = vmatpush3.bf16.msra.mxu0 %v8121_v14 }
 0x2c6   : > { %7368 = vmatprep.subr.bf16.mxu0 %v8140_v19 }
 0x2c9   : > { %7370 = vmatpush3.bf16.msra.mxu0 %v8140_v19 }
 0x2ca   : > { %7372 = vmatprep.subr.bf16.mxu0 %v8160_v25 }
 0x2cd   : > { %7374 = vmatpush3.bf16.msra.mxu0 %v8160_v25 }
 0x2ce   : > { %7376 = vmatprep.subr.bf16.mxu0 %v8174_v29 }
 0x2d1   : > { %7378 = vmatpush3.bf16.msra.mxu0 %v8174_v29 }
 0x2d2   : > { %7380 = vmatprep.subr.bf16.mxu0 %v8195_v34 }
 0x2d5   : > { %7382 = vmatpush3.bf16.msra.mxu0 %v8195_v34 }
 0x2d6   : > { %7384 = vmatprep.subr.bf16.mxu0 %v8207_v39 }
 0x2d9   : > { %7386 = vmatpush3.bf16.msra.mxu0 %v8207_v39 }
 0x2da   : > { %7388 = vmatprep.subr.bf16.mxu0 %v8231_v48 }
 0x2dd   : > { %7390 = vmatpush3.bf16.msra.mxu0 %v8231_v48 }
 0x2de   : > { %7392 = vmatprep.subr.bf16.mxu0 %v8243_v53 }
 0x382   : > { %v6454_v41 = vpop.f32.mrb[2].mxu1 }
 0x383   : > { %v2879_v0 = vsub.f32 %v8346_v63, %v6454_v41  ;;  %v2373_v59 = vpop.f32.mrb[3].mxu1 }
 0x384   : > { %v2878_v1 = vsub.f32 %v8329_v8, %v2373_v59  ;;  %v5474_v59 = vld [vmem:[%s9121_s8 + $0x2] ss:$0 sm:$0xff] }
 0x393   : > { %v6484_v60 = vpop.f32.mrb[6].mxu0 }
 0x394   : > { %v2881_v30 = vmul.f32 %v6484_v60, %v2879_v0  ;;  %v2868_v24 = vpop.f32.mrb[7].mxu0 }
 0x395   : > { %v2880_v31 = vmul.f32 %v2878_v1, %v2868_v24 }
 0x396   : > { %v2889_v32 = vmul.f32 %v5470_v55, %v2881_v30  ;;  %v7877_v30 = vld [vmem:[%s9117_s4] sm:$0xff]  }
 0x397   : > { %v2888_v57 = vmul.f32 %v5470_v55, %v2880_v31 }
 0x398   : > { %v2897_v63 = vadd.f32 %v5471_v10, %v2889_v32 }
 0x399   : > { %v2896_v15 = vadd.f32 %v5471_v10, %v2888_v57 }
 0x39a   : > { %v2899_v51 = vmax.f32 %v2897_v63, 0.0 }
 0x39b   : > { %v2898_v8 = vmax.f32 %v2896_v15, 0.0 }
 0x39d   : > { %2915 = vrot.lane.b32.xlu1 %v2898_v8, %s7952_s22  ;;  %2900 = vrot.lane.b32.xlu0 %v2898_v8, %s7953_s24  ;;  %v2914_v52 = vpack.c.bf16 %v2899_v51, %v2898_v8 }
 0x3a1   : > { %2917 = vrot.lane.b32.xlu1 %v2899_v51, %s7952_s22  ;;  %2902 = vrot.lane.b32.xlu0 %v2899_v51, %s7953_s24  ;;  %s5396_s22 = sshll.u32 %s379_s12, 4  ;;  %s9070_s22 = int_to_ptr.vmem [resolvable:$true] %s5396_s22 }
 0x3a2   : > { %s7886_s21 = scalar_lea.vmem %s9070_s22, 256  ;;  %p7893_p0 = scmp.lt.s32.totalorder %s9070_s22, %s7891_s15 }
 0x3a3   : > { %p7887_p11 = scmp.ne.s32.totalorder %s9070_s22, %s7886_s21  ;;  %p7894_p1 = scmp.lt.s32.totalorder %s7892_s16, %s7886_s21 }
 0x3a5   : > { %498 = vperm.xlu1 %7872, %v490_v21   ;;  %493 = vperm.xlu0 %7871, %v489_v6   ;;  %p7888_p12 = pnand %p7887_p11, %p8056_p5  ;;  %p7895_p2 = por %p7894_p1, %p7893_p0 }
 0x3a7   : > { %p7889_p13 = pneg %p7888_p12 }
 0x3a9   : > { %p7896_p3 = pnand %p7895_p2, %p7889_p13 }
 0x40f   : > { %v2901_v40 = vpop.permute.xlu0 %2900  ;;  %v2916_v46 = vpop.permute.xlu1 %2915 }
 0x410   : > { %v2911_v54 = vmul.f32 %v5472_v28, %v2901_v40  ;;  %v2927_v55 = vmul.f32 %v5474_v59, %v2916_v46 }
 0x413   : > { %v2903_v47 = vpop.permute.xlu0 %2902  ;;  %v2918_v0 = vpop.permute.xlu1 %2917 }
 0x414   : > { %v2912_v12 = vmul.f32 %v5472_v28, %v2903_v47  ;;  %v2928_v1 = vmul.f32 %v5474_v59, %v2918_v0 }
 0x416   : > { %v2913_v41 = vpack.c.bf16 %v2912_v12, %v2911_v54  ;;  %v2929_v60 = vpack.c.bf16 %v2928_v1, %v2927_v55 }
 0x418   : > { %6486 = vmatpush3.bf16.msra.mxu1 %v2913_v41 }
 0x419   : > { %6487 = vmatprep.subr.bf16.mxu1 %v7951_v27 }
 0x41c   : > { %6488 = vmatpush3.bf16.msra.mxu1 %v2914_v52 }
 0x41d   : > { %6489 = vmatprep.subr.bf16.mxu1 %v7951_v27 }
 0x420   : > { %6490 = vmatpush3.bf16.msra.mxu1 %v2929_v60 }
 0x421   : > { %7552 = vmatprep.subr.bf16.mxu1 %v8110_v11 }
 0x423   : > { %6492 = vmatmul.mubr.msk.bf16.vlgmr.msra.gmra.mrb[4].mxu1 %vm2937_vm4, %v7877_v30 }
 0x424   : > { %7554 = vmatpush3.bf16.msra.mxu1 %v8110_v11 }
 0x425   : > { %7556 = vmatprep.subr.bf16.mxu1 %v8121_v14 }
 0x428   : > { %7558 = vmatpush3.bf16.msra.mxu1 %v8121_v14 }
 0x429   : > { %7560 = vmatprep.subr.bf16.mxu1 %v8140_v19 }
 0x42c   : > { %7562 = vmatpush3.bf16.msra.mxu1 %v8140_v19 }
 0x42d   : > { %7564 = vmatprep.subr.bf16.mxu1 %v8160_v25 }
 0x430   : > { %7566 = vmatpush3.bf16.msra.mxu1 %v8160_v25 }
 0x431   : > { %7568 = vmatprep.subr.bf16.mxu1 %v8174_v29 }
 0x434   : > { %7570 = vmatpush3.bf16.msra.mxu1 %v8174_v29 }
 0x435   : > { %7572 = vmatprep.subr.bf16.mxu1 %v8195_v34 }
 0x438   : > { %7574 = vmatpush3.bf16.msra.mxu1 %v8195_v34 }
 0x439   : > { %7576 = vmatprep.subr.bf16.mxu1 %v8207_v39 }
 0x43c   : > { %7578 = vmatpush3.bf16.msra.mxu1 %v8207_v39 }
 0x43d   : > { %7580 = vmatprep.subr.bf16.mxu1 %v8231_v48 }
 0x440   : > { %7582 = vmatpush3.bf16.msra.mxu1 %v8231_v48 }
 0x441   : > { %7584 = vmatprep.subr.bf16.mxu1 %v8243_v53 }
 0x4f6   : > { %v8789_v24 = vpop.f32.mrb[4].mxu1 }
 0x4f7   : > { %v8792_v31 = vand.u32 4294901760, %v8789_v24  ;;  %v3668_v10 = vmul.f32 %v8789_v24, %v8789_v24  ;;  %v6493_v32 = vpop.f32.mrb[5].mxu1 }
 0x4f8   : > { %v8796_v57 = vpop.f32.mrb[6].mxu1 }
 0x4f9   : > { %v8800_v27 = vsub.f32 %v8789_v24, %v8792_v31  ;;  %v8802_v63 = vand.u32 4294901760, %v3668_v10  ;;  %v8805_v15 = vand.u32 4294901760, %v8796_v57  ;;  %v3669_v51 = vmul.f32 %v8796_v57, %v8796_v57  ;;  %v6494_v8 = vpop.f32.mrb[7].mxu1 }
 0x4fb   : > { %v8810_v52 = vsub.f32 %v3668_v10, %v8802_v63  ;;  %v8814_v21 = vsub.f32 %v8796_v57, %v8805_v15  ;;  %v8816_v6 = vand.u32 4294901760, %v3669_v51  ;;  %v3067_v40 = vand.u32 4294901760, %v8800_v27 }
 0x4fd   : > { %v8820_v46 = vsub.f32 %v3669_v51, %v8816_v6  ;;  %v3068_v28 = vsub.f32 %v8800_v27, %v3067_v40  ;;  %v3077_v47 = vand.u32 4294901760, %v8814_v21  ;;  %v3753_v54 = vand.u32 4294901760, %v8810_v52 }
 0x4ff   : > { %v3069_v12 = vand.u32 4294901760, %v3068_v28  ;;  %v3078_v41 = vsub.f32 %v8814_v21, %v3077_v47  ;;  %v3754_v0 = vsub.f32 %v8810_v52, %v3753_v54  ;;  %v3763_v59 = vand.u32 4294901760, %v8820_v46  ;;  %v499_v28 = vpop.permute.xlu1 %498 }
 0x501   : > { %6527 = vmatprep.mubr.f32.mxu0 %v3069_v12  ;;  %v3079_v1 = vand.u32 4294901760, %v3078_v41  ;;  %v3755_v55 = vand.u32 4294901760, %v3754_v0  ;;  %v3764_v60 = vsub.f32 %v8820_v46, %v3763_v59 }
 0x503   : > { %6528 = vmatmul.mubr.f32.vlgmr.msra.gmra.mrb[8].mxu0 %v3079_v1  ;;  %6737 = vmatprep.mubr.f32.mxu1 %v3755_v55  ;;  %v3765_v30 = vand.u32 4294901760, %v3764_v60 }
 0x504   : > { %7394 = vmatpush3.bf16.msra.mxu0 %v8243_v53  ;;  %6562 = vmatprep.mubr.f32.mxu0 %v8792_v31 }
 0x505   : > { %6738 = vmatmul.mubr.f32.vlgmr.msra.gmra.mrb[8].mxu1 %v3765_v30  ;;  %7396 = vmatprep.subr.bf16.mxu0 %v8405_v7 }
 0x506   : > { %7586 = vmatpush3.bf16.msra.mxu1 %v8243_v53  ;;  %6772 = vmatprep.mubr.f32.mxu1 %v8802_v63 }
 0x507   : > { %7588 = vmatprep.subr.bf16.mxu1 %v8405_v7 }
 0x508   : > { %7398 = vmatpush3.bf16.msra.mxu0 %v8405_v7 }
 0x509   : > { %7400 = vmatprep.subr.bf16.mxu0 %v8427_v9 }
 0x50a   : > { %7590 = vmatpush3.bf16.msra.mxu1 %v8405_v7 }
 0x50b   : > { %7592 = vmatprep.subr.bf16.mxu1 %v8427_v9 }
 0x50c   : > { %7402 = vmatpush3.bf16.msra.mxu0 %v8427_v9 }
 0x50d   : > { %7404 = vmatprep.subr.bf16.mxu0 %v8441_v56 }
 0x50e   : > { %7594 = vmatpush3.bf16.msra.mxu1 %v8427_v9 }
 0x50f   : > { %7596 = vmatprep.subr.bf16.mxu1 %v8441_v56 }
 0x510   : > { %7406 = vmatpush3.bf16.msra.mxu0 %v8441_v56 }
 0x511   : > { %7408 = vmatprep.subr.bf16.mxu0 %v8447_v22 }
 0x512   : > { %7598 = vmatpush3.bf16.msra.mxu1 %v8441_v56 }
 0x513   : > { %7600 = vmatprep.subr.bf16.mxu1 %v8447_v22 }
 0x514   : > { %7410 = vmatpush3.bf16.msra.mxu0 %v8447_v22 }
 0x515   : > { %7412 = vmatprep.subr.bf16.mxu0 %v8265_v2 }
 0x516   : > { %7602 = vmatpush3.bf16.msra.mxu1 %v8447_v22 }
 0x517   : > { %7604 = vmatprep.subr.bf16.mxu1 %v8265_v2 }
 0x518   : > { %7414 = vmatpush3.bf16.msra.mxu0 %v8265_v2 }
 0x519   : > { %7416 = vmatprep.subr.bf16.mxu0 %v8285_v35 }
 0x51a   : > { %7606 = vmatpush3.bf16.msra.mxu1 %v8265_v2 }
 0x51b   : > { %7608 = vmatprep.subr.bf16.mxu1 %v8285_v35 }
 0x51c   : > { %7418 = vmatpush3.bf16.msra.mxu0 %v8285_v35 }
 0x51d   : > { %7420 = vmatprep.subr.bf16.mxu0 %v8287_v38 }
 0x51e   : > { %7610 = vmatpush3.bf16.msra.mxu1 %v8285_v35 }
 0x51f   : > { %7612 = vmatprep.subr.bf16.mxu1 %v8287_v38 }
 0x520   : > { %7422 = vmatpush3.bf16.msra.mxu0 %v8287_v38 }
 0x521   : > { %7424 = vmatprep.subr.bf16.mxu0 %v8291_v42 }
 0x522   : > { %7614 = vmatpush3.bf16.msra.mxu1 %v8287_v38 }
 0x523   : > { %6563 = vmatmul.mubr.f32.vlgmr.msra.gmra.mrb[8].mxu0 %v8805_v15  ;;  %7616 = vmatprep.subr.bf16.mxu1 %v8291_v42 }
 0x524   : > { %7426 = vmatpush3.bf16.msra.mxu0 %v8291_v42  ;;  %6597 = vmatprep.mubr.f32.mxu0 %v8800_v27 }
 0x525   : > { %6773 = vmatmul.mubr.f32.vlgmr.msra.gmra.mrb[8].mxu1 %v8816_v6  ;;  %7428 = vmatprep.subr.bf16.mxu0 %v8471_v36 }
 0x526   : > { %7618 = vmatpush3.bf16.msra.mxu1 %v8291_v42  ;;  %6807 = vmatprep.mubr.f32.mxu1 %v8810_v52 }
 0x527   : > { %7620 = vmatprep.subr.bf16.mxu1 %v8471_v36 }
 0x528   : > { %7430 = vmatpush3.bf16.msra.mxu0 %v8471_v36 }
 0x529   : > { %7432 = vmatprep.subr.bf16.mxu0 %v8482_v20 }
 0x52a   : > { %7622 = vmatpush3.bf16.msra.mxu1 %v8471_v36 }
 0x52b   : > { %7624 = vmatprep.subr.bf16.mxu1 %v8482_v20 }
 0x52c   : > { %7434 = vmatpush3.bf16.msra.mxu0 %v8482_v20 }
 0x52d   : > { %7436 = vmatprep.subr.bf16.mxu0 %v8491_v16 }
 0x52e   : > { %7626 = vmatpush3.bf16.msra.mxu1 %v8482_v20 }
 0x52f   : > { %7628 = vmatprep.subr.bf16.mxu1 %v8491_v16 }
 0x530   : > { %7438 = vmatpush3.bf16.msra.mxu0 %v8491_v16 }
 0x531   : > { %7440 = vmatprep.subr.bf16.mxu0 %v8499_v26 }
 0x532   : > { %7630 = vmatpush3.bf16.msra.mxu1 %v8491_v16 }
 0x533   : > { %7632 = vmatprep.subr.bf16.mxu1 %v8499_v26 }
 0x534   : > { %7442 = vmatpush3.bf16.msra.mxu0 %v8499_v26 }
 0x535   : > { %7444 = vmatprep.subr.bf16.mxu0 %v8295_v43 }
 0x536   : > { %7634 = vmatpush3.bf16.msra.mxu1 %v8499_v26 }
 0x537   : > { %7636 = vmatprep.subr.bf16.mxu1 %v8295_v43 }
 0x538   : > { %7446 = vmatpush3.bf16.msra.mxu0 %v8295_v43 }
 0x539   : > { %7448 = vmatprep.subr.bf16.mxu0 %v8299_v44 }
 0x53a   : > { %7638 = vmatpush3.bf16.msra.mxu1 %v8295_v43 }
 0x53b   : > { %7640 = vmatprep.subr.bf16.mxu1 %v8299_v44 }
 0x53c   : > { %7450 = vmatpush3.bf16.msra.mxu0 %v8299_v44 }
 0x53d   : > { %7452 = vmatprep.subr.bf16.mxu0 %v8303_v45 }
 0x53e   : > { %7642 = vmatpush3.bf16.msra.mxu1 %v8299_v44 }
 0x53f   : > { %7644 = vmatprep.subr.bf16.mxu1 %v8303_v45 }
 0x540   : > { %7454 = vmatpush3.bf16.msra.mxu0 %v8303_v45 }
 0x541   : > { %7456 = vmatprep.subr.bf16.mxu0 %v8110_v11 }
 0x542   : > { %7646 = vmatpush3.bf16.msra.mxu1 %v8303_v45 }
 0x543   : > { %6598 = vmatmul.mubr.f32.vlgmr.msra.gmra.mrb[8].mxu0 %v8814_v21  ;;  %7648 = vmatprep.subr.bf16.mxu1 %v8110_v11 }
 0x544   : > { %7458 = vmatpush3.bf16.msra.mxu0 %v8110_v11  ;;  %6632 = vmatprep.mubr.f32.mxu0 %v3067_v40 }
 0x545   : > { %6808 = vmatmul.mubr.f32.vlgmr.msra.gmra.mrb[8].mxu1 %v8820_v46  ;;  %7460 = vmatprep.subr.bf16.mxu0 %v8121_v14 }
 0x546   : > { %7650 = vmatpush3.bf16.msra.mxu1 %v8110_v11  ;;  %6842 = vmatprep.mubr.f32.mxu1 %v3753_v54 }
 0x547   : > { %7652 = vmatprep.subr.bf16.mxu1 %v8121_v14 }
 0x548   : > { %7462 = vmatpush3.bf16.msra.mxu0 %v8121_v14 }
 0x549   : > { %7464 = vmatprep.subr.bf16.mxu0 %v8140_v19 }
 0x54a   : > { %7654 = vmatpush3.bf16.msra.mxu1 %v8121_v14 }
 0x54b   : > { %7656 = vmatprep.subr.bf16.mxu1 %v8140_v19 }
 0x54c   : > { %7466 = vmatpush3.bf16.msra.mxu0 %v8140_v19 }
 0x54d   : > { %7468 = vmatprep.subr.bf16.mxu0 %v8160_v25 }
 0x54e   : > { %7658 = vmatpush3.bf16.msra.mxu1 %v8140_v19 }
 0x54f   : > { %7660 = vmatprep.subr.bf16.mxu1 %v8160_v25 }
 0x550   : > { %7470 = vmatpush3.bf16.msra.mxu0 %v8160_v25 }
 0x551   : > { %7472 = vmatprep.subr.bf16.mxu0 %v8174_v29 }
 0x552   : > { %7662 = vmatpush3.bf16.msra.mxu1 %v8160_v25 }
 0x553   : > { %7664 = vmatprep.subr.bf16.mxu1 %v8174_v29 }
 0x554   : > { %7474 = vmatpush3.bf16.msra.mxu0 %v8174_v29 }
 0x555   : > { %7476 = vmatprep.subr.bf16.mxu0 %v8195_v34 }
 0x556   : > { %7666 = vmatpush3.bf16.msra.mxu1 %v8174_v29 }
 0x557   : > { %7668 = vmatprep.subr.bf16.mxu1 %v8195_v34 }
 0x558   : > { %7478 = vmatpush3.bf16.msra.mxu0 %v8195_v34 }
 0x559   : > { %7480 = vmatprep.subr.bf16.mxu0 %v8207_v39 }
 0x55a   : > { %7670 = vmatpush3.bf16.msra.mxu1 %v8195_v34 }
 0x55b   : > { %7672 = vmatprep.subr.bf16.mxu1 %v8207_v39 }
 0x55c   : > { %7482 = vmatpush3.bf16.msra.mxu0 %v8207_v39 }
 0x55d   : > { %7484 = vmatprep.subr.bf16.mxu0 %v8231_v48 }
 0x55e   : > { %7674 = vmatpush3.bf16.msra.mxu1 %v8207_v39 }
 0x55f   : > { %7676 = vmatprep.subr.bf16.mxu1 %v8231_v48 }
 0x560   : > { %7486 = vmatpush3.bf16.msra.mxu0 %v8231_v48 }
 0x561   : > { %7488 = vmatprep.subr.bf16.mxu0 %v8559_v33 }
 0x562   : > { %7678 = vmatpush3.bf16.msra.mxu1 %v8231_v48 }
 0x563   : > { %6633 = vmatmul.mubr.f32.vlgmr.msra.gmra.mrb[8].mxu0 %v3077_v47  ;;  %7680 = vmatprep.subr.bf16.mxu1 %v8559_v33 }
 0x564   : > { %7490 = vmatpush3.bf16.msra.mxu0 %v8559_v33  ;;  %6667 = vmatprep.mubr.f32.mxu0 %v8792_v31 }
 0x565   : > { %6843 = vmatmul.mubr.f32.vlgmr.msra.gmra.mrb[8].mxu1 %v3763_v59  ;;  %7492 = vmatprep.subr.bf16.mxu0 %v8569_v23 }
 0x566   : > { %7682 = vmatpush3.bf16.msra.mxu1 %v8559_v33  ;;  %6877 = vmatprep.mubr.f32.mxu1 %v8802_v63 }
 0x567   : > { %7684 = vmatprep.subr.bf16.mxu1 %v8569_v23 }
 0x568   : > { %7494 = vmatpush3.bf16.msra.mxu0 %v8569_v23 }
 0x569   : > { %7496 = vmatprep.subr.bf16.mxu0 %v8584_v49 }
 0x56a   : > { %7686 = vmatpush3.bf16.msra.mxu1 %v8569_v23 }
 0x56b   : > { %7688 = vmatprep.subr.bf16.mxu1 %v8584_v49 }
 0x56c   : > { %7498 = vmatpush3.bf16.msra.mxu0 %v8584_v49 }
 0x56d   : > { %7500 = vmatprep.subr.bf16.mxu0 %v8595_v50 }
 0x56e   : > { %7690 = vmatpush3.bf16.msra.mxu1 %v8584_v49 }
 0x56f   : > { %7692 = vmatprep.subr.bf16.mxu1 %v8595_v50 }
 0x570   : > { %7502 = vmatpush3.bf16.msra.mxu0 %v8595_v50 }
 0x571   : > { %7504 = vmatprep.subr.bf16.mxu0 %v8605_v58 }
 0x572   : > { %7694 = vmatpush3.bf16.msra.mxu1 %v8595_v50 }
 0x573   : > { %7696 = vmatprep.subr.bf16.mxu1 %v8605_v58 }
 0x574   : > { %7506 = vmatpush3.bf16.msra.mxu0 %v8605_v58 }
 0x575   : > { %7508 = vmatprep.subr.bf16.mxu0 %v8615_v3 }
 0x576   : > { %7698 = vmatpush3.bf16.msra.mxu1 %v8605_v58 }
 0x577   : > { %7700 = vmatprep.subr.bf16.mxu1 %v8615_v3 }
 0x578   : > { %7510 = vmatpush3.bf16.msra.mxu0 %v8615_v3 }
 0x579   : > { %7512 = vmatprep.subr.bf16.mxu0 %v8625_v18 }
 0x57a   : > { %7702 = vmatpush3.bf16.msra.mxu1 %v8615_v3 }
 0x57b   : > { %7704 = vmatprep.subr.bf16.mxu1 %v8625_v18 }
 0x57c   : > { %7514 = vmatpush3.bf16.msra.mxu0 %v8625_v18 }
 0x57d   : > { %7516 = vmatprep.subr.bf16.mxu0 %v8635_v37 }
 0x57e   : > { %7706 = vmatpush3.bf16.msra.mxu1 %v8625_v18 }
 0x57f   : > { %7708 = vmatprep.subr.bf16.mxu1 %v8635_v37 }
 0x580   : > { %7518 = vmatpush3.bf16.msra.mxu0 %v8635_v37 }
 0x581   : > { %7520 = vmatprep.subr.bf16.mxu0 %v8110_v11 }
 0x582   : > { %7710 = vmatpush3.bf16.msra.mxu1 %v8635_v37 }
 0x583   : > { %6668 = vmatmul.mubr.f32.vlgmr.msra.gmra.mrb[8].mxu0 %v8805_v15  ;;  %7712 = vmatprep.subr.bf16.mxu1 %v8110_v11 }
 0x584   : > { %7522 = vmatpush3.bf16.msra.mxu0 %v8110_v11  ;;  %6702 = vmatprep.mubr.f32.mxu0 %v8792_v31 }
 0x585   : > { %6878 = vmatmul.mubr.f32.vlgmr.msra.gmra.mrb[8].mxu1 %v8816_v6  ;;  %7524 = vmatprep.subr.bf16.mxu0 %v8121_v14 }
 0x586   : > { %7714 = vmatpush3.bf16.msra.mxu1 %v8110_v11  ;;  %6912 = vmatprep.mubr.f32.mxu1 %v8802_v63 }
 0x587   : > { %7716 = vmatprep.subr.bf16.mxu1 %v8121_v14 }
 0x588   : > { %7526 = vmatpush3.bf16.msra.mxu0 %v8121_v14 }
 0x589   : > { %7528 = vmatprep.subr.bf16.mxu0 %v8140_v19 }
 0x58a   : > { %7718 = vmatpush3.bf16.msra.mxu1 %v8121_v14 }
 0x58b   : > { %7720 = vmatprep.subr.bf16.mxu1 %v8140_v19 }
 0x58c   : > { %7530 = vmatpush3.bf16.msra.mxu0 %v8140_v19 }
 0x58d   : > { %7532 = vmatprep.subr.bf16.mxu0 %v8160_v25 }
 0x58e   : > { %7722 = vmatpush3.bf16.msra.mxu1 %v8140_v19 }
 0x58f   : > { %7724 = vmatprep.subr.bf16.mxu1 %v8160_v25 }
 0x590   : > { %7534 = vmatpush3.bf16.msra.mxu0 %v8160_v25 }
 0x591   : > { %7536 = vmatprep.subr.bf16.mxu0 %v8174_v29 }
 0x592   : > { %7726 = vmatpush3.bf16.msra.mxu1 %v8160_v25 }
 0x593   : > { %7728 = vmatprep.subr.bf16.mxu1 %v8174_v29 }
 0x594   : > { %7538 = vmatpush3.bf16.msra.mxu0 %v8174_v29 }
 0x595   : > { %7540 = vmatprep.subr.bf16.mxu0 %v8195_v34 }
 0x596   : > { %7730 = vmatpush3.bf16.msra.mxu1 %v8174_v29 }
 0x597   : > { %7732 = vmatprep.subr.bf16.mxu1 %v8195_v34 }
 0x598   : > { %7542 = vmatpush3.bf16.msra.mxu0 %v8195_v34 }
 0x599   : > { %7544 = vmatprep.subr.bf16.mxu0 %v8207_v39 }
 0x59a   : > { %7734 = vmatpush3.bf16.msra.mxu1 %v8195_v34 }
 0x59b   : > { %7736 = vmatprep.subr.bf16.mxu1 %v8207_v39 }
 0x59c   : > { %7546 = vmatpush3.bf16.msra.mxu0 %v8207_v39 }
 0x59d   : > { %7548 = vmatprep.subr.bf16.mxu0 %v8231_v48 }
 0x59e   : > { %7738 = vmatpush3.bf16.msra.mxu1 %v8207_v39 }
 0x59f   : > { %7740 = vmatprep.subr.bf16.mxu1 %v8231_v48 }
 0x5a0   : > { %7550 = vmatpush3.bf16.msra.mxu0 %v8231_v48 }
 0x5a1   : > { %6915 = vmatprep.subr.mxu0 %v8686_v61 }
 0x5a2   : > { %7742 = vmatpush3.bf16.msra.mxu1 %v8231_v48 }
 0x5a3   : > { %6703 = vmatmul.mubr.f32.vlgmr.msra.gmra.mrb[8].mxu0 %v8805_v15  ;;  %6945 = vmatprep.subr.mxu1 %v8686_v61 }
 0x5a4   : > { %6916 = vmatpush3.msra.mxu0 %v8686_v61 }
 0x5a5   : > { %6913 = vmatmul.mubr.f32.vlgmr.msra.gmra.mrb[8].mxu1 %v8816_v6  ;;  %6920 = vmatprep.subr.mxu0 %v8700_v62 }
 0x5a6   : > { %6946 = vmatpush3.msra.mxu1 %v8686_v61 }
 0x5a7   : > { %6950 = vmatprep.subr.mxu1 %v8700_v62 }
 0x676   : > { %v6704_v11 = vpop.f32.mrb[8].mxu0 }
 0x677   : > { %v4355_v14 = vmul.f32 0.0625, %v6704_v11  ;;  %v3658_v19 = vpop.f32.mrb[9].mxu0 }
 0x678   : > { %v4354_v25 = vmul.f32 0.0625, %v3658_v19  ;;  %v6914_v29 = vpop.f32.mrb[8].mxu1 }
 0x679   : > { %v4359_v34 = vmul.f32 %v4355_v14, %v4355_v14  ;;  %v4370_v39 = vsel %vm1887_vm2, %v4355_v14, 0  ;;  %v4357_v48 = vmul.f32 0.0625, %v6914_v29  ;;  %v4344_v53 = vpop.f32.mrb[9].mxu1 }
 0x67a   : > { %v9026_v2 = vand.u32 4294901760, %v4370_v39  ;;  %v4358_v35 = vmul.f32 %v4354_v25, %v4354_v25  ;;  %v4367_v38 = vsel %vm1887_vm2, %v4354_v25, 0  ;;  %v4356_v42 = vmul.f32 0.0625, %v4344_v53 }
 0x67b   : > { %v4438_v43 = vand.u32 4294901760, %v4367_v38  ;;  %v4361_v44 = vsub.f32 %v4357_v48, %v4359_v34 }
 0x67c   : > { %v4449_v45 = vsub.f32 %v4370_v39, %v9026_v2  ;;  %v4360_v7 = vsub.f32 %v4356_v42, %v4358_v35 }
 0x67d   : > { %v4439_v9 = vsub.f32 %v4367_v38, %v4438_v43  ;;  %v4363_v56 = vadd.f32 1e-05, %v4361_v44 }
 0x67e   : > { %v4450_v22 = vand.u32 4294901760, %v4449_v45  ;;  %v4362_v36 = vadd.f32 1e-05, %v4360_v7 }
 0x67f   : > { %7882 = vrsqrt.f32 %v4363_v56  ;;  %v4440_v20 = vand.u32 4294901760, %v4439_v9 }
 0x680   : > { %7884 = vrsqrt.f32 %v4362_v36  ;;  %v4451_v16 = vsub.f32 %v4449_v45, %v4450_v22 }
 0x681   : > { %v4441_v26 = vsub.f32 %v4439_v9, %v4440_v20 }
 0x682   : > { %v4452_v23 = vand.u32 4294901760, %v4451_v16 }
 0x683   : > { %v4442_v33 = vand.u32 4294901760, %v4441_v26 }
 0x685   : > { %6917 = vmatprep.mubr.f32.mxu0 %v4442_v33 }
 0x686   : > { %6918 = vmatmul.mubr.f32.vlgmr.msra.gmra.mrb[10].mxu0 %v4452_v23 }
 0x687   : > { %6922 = vmatprep.mubr.f32.mxu0 %v4438_v43  ;;  %6921 = vmatpush3.msra.mxu0 %v8700_v62 }
 0x688   : > { %6925 = vmatprep.subr.mxu0 %v8692_v4 }
 0x689   : > { %v7883_v49 = vpop.eup %7882 }
 0x68a   : > { %v7885_v50 = vpop.eup %7884  ;;  %v4865_v58 = vsel %vm1887_vm2, %v7883_v49, 0 }
 0x68b   : > { %v4862_v3 = vsel %vm1887_vm2, %v7885_v50, 0  ;;  %v4943_v18 = vand.u32 4294901760, %v4865_v58 }
 0x68c   : > { %v4933_v37 = vand.u32 4294901760, %v4862_v3 }
 0x68d   : > { %v4944_v31 = vsub.f32 %v4865_v58, %v4943_v18 }
 0x68e   : > { %6923 = vmatmul.mubr.f32.vlgmr.msra.gmra.mrb[10].mxu0 %v9026_v2  ;;  %v4934_v10 = vsub.f32 %v4862_v3, %v4933_v37 }
 0x68f   : > { %6927 = vmatprep.mubr.f32.mxu0 %v4439_v9  ;;  %6926 = vmatpush3.msra.mxu0 %v8692_v4  ;;  %v4945_v32 = vand.u32 4294901760, %v4944_v31 }
 0x690   : > { %v4935_v27 = vand.u32 4294901760, %v4934_v10  ;;  %6930 = vmatprep.subr.mxu0 %v8686_v61 }
 0x691   : > { %v4946_v63 = vsub.f32 %v4944_v31, %v4945_v32 }
 0x692   : > { %v4936_v15 = vsub.f32 %v4934_v10, %v4935_v27 }
 0x693   : > { %v4947_v8 = vand.u32 4294901760, %v4946_v63 }
 0x694   : > { %v4937_v51 = vand.u32 4294901760, %v4936_v15 }
 0x696   : > { %6928 = vmatmul.mubr.f32.vlgmr.msra.gmra.mrb[10].mxu0 %v4449_v45  ;;  %6947 = vmatprep.mubr.f32.mxu1 %v4937_v51 }
 0x697   : > { %6932 = vmatprep.mubr.f32.mxu0 %v4440_v20  ;;  %6948 = vmatmul.mubr.f32.vlgmr.msra.gmra.mrb[10].mxu1 %v4947_v8 }
 0x698   : > { %6951 = vmatpush3.msra.mxu1 %v8700_v62  ;;  %6952 = vmatprep.mubr.f32.mxu1 %v4933_v37 }
 0x699   : > { %6931 = vmatpush3.msra.mxu0 %v8686_v61  ;;  %6955 = vmatprep.subr.mxu1 %v8692_v4 }
 0x69a   : > { %6935 = vmatprep.subr.mxu0 %v8696_v17 }
 0x69e   : > { %6933 = vmatmul.mubr.f32.vlgmr.msra.gmra.mrb[10].mxu0 %v4450_v22 }
 0x69f   : > { %6937 = vmatprep.mubr.f32.mxu0 %v4438_v43  ;;  %6953 = vmatmul.mubr.f32.vlgmr.msra.gmra.mrb[10].mxu1 %v4943_v18 }
 0x6a0   : > { %6956 = vmatpush3.msra.mxu1 %v8692_v4  ;;  %6957 = vmatprep.mubr.f32.mxu1 %v4934_v10 }
 0x6a1   : > { %6936 = vmatpush3.msra.mxu0 %v8696_v17  ;;  %6960 = vmatprep.subr.mxu1 %v8686_v61 }
 0x6a2   : > { %6940 = vmatprep.subr.mxu0 %v8686_v61 }
 0x6a6   : > { %6938 = vmatmul.mubr.f32.vlgmr.msra.gmra.mrb[10].mxu0 %v9026_v2 }
 0x6a7   : > { %6942 = vmatprep.mubr.f32.mxu0 %v4438_v43  ;;  %6958 = vmatmul.mubr.f32.vlgmr.msra.gmra.mrb[10].mxu1 %v4944_v31 }
 0x6a8   : > { %6961 = vmatpush3.msra.mxu1 %v8686_v61  ;;  %6962 = vmatprep.mubr.f32.mxu1 %v4935_v27 }
 0x6a9   : > { %6941 = vmatpush3.msra.mxu0 %v8686_v61  ;;  %6965 = vmatprep.subr.mxu1 %v8696_v17 }
 0x6ae   : > { %6943 = vmatmul.mubr.f32.vlgmr.msra.gmra.mrb[10].mxu0 %v9026_v2 }
 0x6af   : > { %6963 = vmatmul.mubr.f32.vlgmr.msra.gmra.mrb[10].mxu1 %v4945_v32 }
 0x6b0   : > { %6966 = vmatpush3.msra.mxu1 %v8696_v17  ;;  %6967 = vmatprep.mubr.f32.mxu1 %v4933_v37  ;;  %v5477_v17 = vld [vmem:[%s9118_s5] ss:$0 sm:$0xff] }
 0x6b1   : > { %6970 = vmatprep.subr.mxu1 %v8686_v61 }
 0x6b7   : > { %6968 = vmatmul.mubr.f32.vlgmr.msra.gmra.mrb[10].mxu1 %v4943_v18 }
 0x6b8   : > { %6971 = vmatpush3.msra.mxu1 %v8686_v61  ;;  %6972 = vmatprep.mubr.f32.mxu1 %v4933_v37  ;;  %v5478_v61 = vld [vmem:[%s9119_s6] ss:$0 sm:$0xff] }
 0x6bf   : > { %6973 = vmatmul.mubr.f32.vlgmr.msra.gmra.mrb[10].mxu1 %v4943_v18 }
 0x781   : > { %v6944_v4 = vpop.f32.mrb[10].mxu0 }
 0x782   : > { %v5357_v62 = vsub.f32 %v8796_v57, %v6944_v4  ;;  %v4851_v52 = vpop.f32.mrb[11].mxu0  ;;  %v494_v57 = vpop.permute.xlu0 %493 }
 0x783   : > { %v5356_v21 = vsub.f32 %v8789_v24, %v4851_v52  ;;  %v502_v24 = vadd.f32 %v8344_v13, %v499_v28  ;;  %v501_v0 = vadd.f32 %v8327_v5, %v494_v57 }
 0x792   : > { %v6974_v6 = vpop.f32.mrb[10].mxu1 }
 0x793   : > { %v5359_v40 = vmul.f32 %v6974_v6, %v5357_v62  ;;  %v5346_v46 = vpop.f32.mrb[11].mxu1 }
 0x794   : > { %v5358_v47 = vmul.f32 %v5356_v21, %v5346_v46 }
 0x795   : > { %v5367_v54 = vmul.f32 %v5477_v17, %v5359_v40 }
 0x796   : > { %v5366_v12 = vmul.f32 %v5477_v17, %v5358_v47 }
 0x797   : > { %v5375_v41 = vadd.f32 %v5478_v61, %v5367_v54 }
 0x798   : > { %v5374_v59 = vadd.f32 %v5478_v61, %v5366_v12 }
 0x799   : > { %v5377_v1 = vadd.f32 %v5375_v41, %v502_v24 }
 0x79a   : > { %v5376_v55 = vadd.f32 %v5374_v59, %v501_v0 }
 0x79b   : > { %v5379_v60 = vmax.f32 %v5377_v1, 0.0 }
 0x79c   : > { %v5378_v13 = vmax.f32 %v5376_v55, 0.0 }
 0x79d   : > { %5381 = vst [vmem:[%s379_s12 + $0x8] sm:$0xff] %v5379_v60 }
 0x79e   : > { %5380 = vst [vmem:[%s379_s12] sm:$0xff] %v5378_v13 }
 0x79f   : > { %7899 = shalt.err (!%p7896_p3)
}
 0x7a0   : > { %s7900_s25 = scalar_lea.hbm %s9068_s13, 256  ;;  %s7904_s30 = scalar_lea.hbm %s9124_s11, 512 }
 0x7a1   : > { %p7901_p4 = scmp.ne.s32.totalorder %s9068_s13, %s7900_s25  ;;  %p7905_p9 = scmp.lt.u32.totalorder %s9068_s13, %s9124_s11 }
 0x7a2   : > { %p7906_p10 = scmp.lt.u32.totalorder %s7904_s30, %s7900_s25  ;;  %p7908_p12 = scmp.lt.u32.totalorder %s7900_s25, %s9068_s13 }
 0x7a3   : > { %p7902_p7 = pnand %p7901_p4, %p8056_p5 }
 0x7a4   : > { %p7907_p11 = por %p7906_p10, %p7905_p9 }
 0x7a5   : > { %p7903_p8 = pneg %p7902_p7 }
 0x7a6   : > { %p7909_p13 = por %p7908_p12, %p7907_p11 }
 0x7a8   : > { %p7910_p0 = pnand %p7909_p13, %p7903_p8 }
 0x7aa   : > { %7913 = shalt.err (!%p7910_p0)
}
 0x7ab   : > { %s7956_s21 = smov 128   ;;  %s7957_s16 = smov 8  }
 0x7ac   : > { %7825 = dma.vmem_to_hbm [thread:$0]  (%p8056_p5), %s9070_s22, 256, %s9068_s13, %s9072_s14, %s7956_s21, %s7956_s21, %s7957_s16  }
 0x7ad PF: > { %p7831_p1 = scmp.ge.s32.totalorder %s7948_s20, 2  ;;  %s5411_s12 = sand.u32 1, %s7936_s17  }
 0x7ae   : > { %s5412_s25 = scalar_lea.sflag [#allocation3], %s5411_s12 }
 0x7af   : > { %p7828_p2 = pnand %p7831_p1, %p8060_p6 }
 0x7b1   : > { %7931 = dma.done.wait (!%p7828_p2), %s5412_s25, 256  }
 0x7b2   : > { %7933 = vsyncadd (!%p7828_p2), %s5412_s25, 4294967040  ;;  %p21_p3 = scmp.ge.s32.totalorder %s8043_s23, 4   ;;  %s9153_s17 = smov %s7940_s18 }
 0x7b3   : > { %s9154_s18 = smov %s7944_s19  ;;  %s9155_s19 = smov %s8054_s26 }
 0x7b4   : > { %s9156_s20 = smov %s8043_s23  ;;  %23 = sbr.rel (!%p21_p3) target bundleno = 3 (0x3), region = 100 }
 0x7bb   :  { %5417 = vsyncpa [#allocation3], 1 }
 0x7bc   :  { %5419 = vsyncpa [#allocation3 + $0x1], 1 }

</bundles_post_ra>
